<compile_context>
chip_gen: v5e
topology: v5e:2x2
jax: 0.10.0
libtpu: 0.0.40
codegen_flags: <defaults>
</compile_context>

<pallas_src>
import jax
import jax.numpy as jnp
from jax import lax
from jax.experimental import pallas as pl
from jax.experimental.pallas import tpu as pltpu


def _round_up(x, m):
    return (x + m - 1) // m * m


# ----------------------------- Pallas kernel ------------------------------ #
def parser_mlp_kernel(idx_ref, tab_ref, w1_ref, b1_ref, w2_ref, b2_ref,
                      o_ref, tw_ref):
    """Fused: one-hot gather -> Linear1 (via folded table) -> x^3 -> Linear2 -> ReLU."""
    TB, NS = idx_ref.shape          # batch tile, total feature slots (n_w+n_p+n_d)
    VPL, D = tab_ref.shape          # stacked (word|pos|dep) vocab rows (128-padded), emb dim
    H1P = w1_ref.shape[1]           # padded hidden size

    # ---- one-time weight fold: TW[f*VPL:(f+1)*VPL, :] = table @ W1_f ----
    # Runs only on the first grid step; the scratch persists across batch tiles
    # (grid axis is marked "arbitrary" for exactly this reason).
    @pl.when(pl.program_id(0) == 0)
    def _():
        for f in range(NS):                                   # static, unrolled
            tw_ref[f * VPL:(f + 1) * VPL, :] = jnp.dot(
                tab_ref[...], w1_ref[f * D:(f + 1) * D, :],
                preferred_element_type=jnp.float32)

    idx = idx_ref[...]                                        # [TB, NS] int32 (pre-offset)
    # Hoisted iota (JAX does not CSE broadcast/iota inside the unrolled loop).
    col = lax.broadcasted_iota(jnp.int32, (TB, VPL), 1)

    # h = x @ W1 = sum_f onehot(idx[:, f]) @ (table @ W1_f)
    # Each term is a full-K (128) MXU matmul with a lane-dense 128-wide output.
    acc = jnp.zeros((TB, H1P), jnp.float32)
    for f in range(NS):                                       # static, unrolled
        sel = (col == idx[:, f:f + 1]).astype(jnp.float32)    # [TB, VPL] one-hot
        acc = acc + jnp.dot(sel, tw_ref[f * VPL:(f + 1) * VPL, :],
                            preferred_element_type=jnp.float32)

    h = acc + b1_ref[...]            # bias broadcast [1, H1P]
    h3 = h * h * h                   # cubic activation (torch.pow(h, 3))
    # TODO(synk): nn.Dropout is identity at inference; training-mode dropout would
    # use pltpu.prng_seed + pltpu.prng_random_bits inside the kernel.
    out = jnp.dot(h3, w2_ref[...], preferred_element_type=jnp.float32) + b2_ref[...]
    o_ref[...] = jnp.maximum(out, 0.0)


# ------------------------------- wrapper ----------------------------------- #
def parser_forward(word_idx, pos_idx, dep_idx, params):
    """ParserModel.forward: everything past tiny table stacking runs in one kernel."""
    wtab = params["word_emb"].astype(jnp.float32)
    ptab = params["pos_emb"].astype(jnp.float32)
    dtab = params["dep_emb"].astype(jnp.float32)
    W1, b1 = params["W1"], params["b1"]
    W2, b2 = params["W2"], params["b2"]

    B, n_w = word_idx.shape
    n_p = pos_idx.shape[1]
    n_d = dep_idx.shape[1]
    Vw, D = wtab.shape
    Vp = ptab.shape[0]
    Vd = dtab.shape[0]
    F_in, H1 = W1.shape
    C = W2.shape[1]
    NS = n_w + n_p + n_d
    assert F_in == NS * D, "embed_to_hidden1 input dim mismatch"

    # --- tiny glue (few KB): stack the three tables, offset indices into the stack.
    VT = Vw + Vp + Vd
    VPL = _round_up(VT, 128)          # lane-dense one-hot / gather-matmul tiles
    tab = jnp.pad(jnp.concatenate([wtab, ptab, dtab], axis=0),
                  ((0, VPL - VT), (0, 0)))
    idx = jnp.concatenate(
        [word_idx, pos_idx + Vw, dep_idx + Vw + Vp], axis=1).astype(jnp.int32)

    # --- pad to (8, 128)-friendly, lane-dense shapes (padding is exact zeros) ---
    BP = _round_up(B, 8)
    TB = BP if BP <= 128 else 128     # batch tile
    BP = _round_up(BP, TB)
    H1P = _round_up(H1, 128)
    CP = _round_up(C, 128)
    idx_p = jnp.pad(idx, ((0, BP - B), (0, 0)))
    W1p = jnp.pad(W1.astype(jnp.float32), ((0, 0), (0, H1P - H1)))
    b1p = jnp.pad(b1.astype(jnp.float32).reshape(1, -1), ((0, 0), (0, H1P - H1)))
    W2p = jnp.pad(W2.astype(jnp.float32), ((0, H1P - H1), (0, CP - C)))
    b2p = jnp.pad(b2.astype(jnp.float32).reshape(1, -1), ((0, 0), (0, CP - C)))

    n_tiles = BP // TB
    flops = (2 * NS * VPL * D * H1P                       # one-time weight fold
             + 2 * BP * (NS * VPL * H1P + H1P * CP))      # gather+L1 and L2 matmuls
    bytes_accessed = 4 * (idx_p.size + tab.size + W1p.size + b1p.size
                          + W2p.size + b2p.size + BP * CP)

    out = pl.pallas_call(
        parser_mlp_kernel,
        out_shape=jax.ShapeDtypeStruct((BP, CP), jnp.float32),
        grid_spec=pltpu.PrefetchScalarGridSpec(
            num_scalar_prefetch=0,
            grid=(n_tiles,),
            in_specs=[
                pl.BlockSpec((TB, NS), lambda i: (i, 0)),        # indices: batch-tiled
                pl.BlockSpec((VPL, D), lambda i: (0, 0)),        # stacked emb table
                pl.BlockSpec((F_in, H1P), lambda i: (0, 0)),     # W1
                pl.BlockSpec((1, H1P), lambda i: (0, 0)),        # b1
                pl.BlockSpec((H1P, CP), lambda i: (0, 0)),       # W2
                pl.BlockSpec((1, CP), lambda i: (0, 0)),         # b2
            ],
            out_specs=pl.BlockSpec((TB, CP), lambda i: (i, 0)),
            scratch_shapes=[pltpu.VMEM((NS * VPL, H1P), jnp.float32)],  # folded tab@W1
        ),
        # "arbitrary": the folded-weight scratch is computed on step 0 and reused
        # by later batch tiles, so grid steps are not independent.
        compiler_params=pltpu.CompilerParams(
            dimension_semantics=("arbitrary",)),
        cost_estimate=pl.CostEstimate(flops=flops, transcendentals=0,
                                      bytes_accessed=bytes_accessed),
    )(idx_p, tab, W1p, b1p, W2p, b2p)

    return out[:B, :C]


# ----------------------- deterministic parameter setup -------------------- #
def make_params(key, *, word_vocab, pos_vocab, dep_vocab,
                n_w, n_p, n_d, emb_dim, l1_hidden, num_classes):
    ks = jax.random.split(key, 7)
    F_in = (n_w + n_p + n_d) * emb_dim
    initrange = 0.1
    return {
        "word_emb": jax.random.normal(ks[0], (word_vocab, emb_dim), jnp.float32) * 0.01,
        "pos_emb":  jax.random.normal(ks[1], (pos_vocab, emb_dim), jnp.float32) * 0.01,
        "dep_emb":  jax.random.normal(ks[2], (dep_vocab, emb_dim), jnp.float32) * 0.01,
        # stored as [in, out] (transposed vs. nn.Linear.weight), uniform(-0.1, 0.1)
        "W1": jax.random.uniform(ks[3], (F_in, l1_hidden), jnp.float32,
                                 minval=-initrange, maxval=initrange),
        "b1": jax.random.uniform(ks[4], (1, l1_hidden), jnp.float32,
                                 minval=-0.01, maxval=0.01),
        "W2": jax.random.uniform(ks[5], (l1_hidden, num_classes), jnp.float32,
                                 minval=-initrange, maxval=initrange),
        "b2": jax.random.uniform(ks[6], (1, num_classes), jnp.float32,
                                 minval=-0.01, maxval=0.01),
    }


# ------------------------------ pure-JAX ref ------------------------------ #
def parser_forward_ref(word_idx, pos_idx, dep_idx, params):
    B = word_idx.shape[0]
    w_e = jnp.take(params["word_emb"], word_idx, axis=0).reshape(B, -1)
    p_e = jnp.take(params["pos_emb"], pos_idx, axis=0).reshape(B, -1)
    d_e = jnp.take(params["dep_emb"], dep_idx, axis=0).reshape(B, -1)
    x = jnp.concatenate([w_e, p_e, d_e], axis=1)
    h = x @ params["W1"] + params["b1"]
    h3 = h ** 3
    return jnp.maximum(h3 @ params["W2"] + params["b2"], 0.0)


if __name__ == "__main__":
    # Small config (ParserModel hyperparameters)
    n_w, n_p, n_d = 6, 6, 4          # word/pos/dep feature counts
    emb_dim = 8                      # -> concat feature dim = 16 * 8 = 128
    l1_hidden = 32
    num_classes = 3
    word_vocab, pos_vocab, dep_vocab = 50, 20, 20
    B = 4

    key = jax.random.PRNGKey(0)
    kp, kw, kq, kd = jax.random.split(key, 4)
    params = make_params(kp, word_vocab=word_vocab, pos_vocab=pos_vocab,
                         dep_vocab=dep_vocab, n_w=n_w, n_p=n_p, n_d=n_d,
                         emb_dim=emb_dim, l1_hidden=l1_hidden,
                         num_classes=num_classes)

    word_idx = jax.random.randint(kw, (B, n_w), 0, word_vocab, dtype=jnp.int32)
    pos_idx = jax.random.randint(kq, (B, n_p), 0, pos_vocab, dtype=jnp.int32)
    dep_idx = jax.random.randint(kd, (B, n_d), 0, dep_vocab, dtype=jnp.int32)

    fwd = jax.jit(parser_forward)
    out = fwd(word_idx, pos_idx, dep_idx, params)
    jax.block_until_ready(out)

    ref = parser_forward_ref(word_idx, pos_idx, dep_idx, params)
    assert out.shape == (B, num_classes)
    assert jnp.allclose(out, ref, atol=1e-5, rtol=1e-5), "mismatch vs reference"

    print("KERNEL_OK")
</pallas_src>

<mosaic_0001>
module attributes {stable_mosaic.version = 11 : i64} {
  func.func @parser_mlp_kernel(%arg0: i32, %arg1: memref<8x16xi32, #tpu.memory_space<vmem>>, %arg2: memref<128x8xf32, #tpu.memory_space<vmem>>, %arg3: memref<128x128xf32, #tpu.memory_space<vmem>>, %arg4: memref<1x128xf32, #tpu.memory_space<vmem>>, %arg5: memref<128x128xf32, #tpu.memory_space<vmem>>, %arg6: memref<1x128xf32, #tpu.memory_space<vmem>>, %arg7: memref<8x128xf32, #tpu.memory_space<vmem>>, %arg8: memref<2048x128xf32, #tpu.memory_space<vmem>>) attributes {dimension_semantics = [#tpu.dimension_semantics<arbitrary>], iteration_bounds = array<i64: 1>, scalar_prefetch = 0 : i64, scratch_operands = 1 : i64, tpu.core_type = #tpu.core_type<tc>, window_params = [{transform_indices = @transform_0, window_bounds = array<i64: 8, 16>}, {pipeline_mode = #tpu.pipeline_mode<synchronous>, transform_indices = @transform_1, window_bounds = array<i64: 128, 8>}, {pipeline_mode = #tpu.pipeline_mode<synchronous>, transform_indices = @transform_2, window_bounds = array<i64: 128, 128>}, {pipeline_mode = #tpu.pipeline_mode<synchronous>, transform_indices = @transform_3, window_bounds = array<i64: 1, 128>}, {pipeline_mode = #tpu.pipeline_mode<synchronous>, transform_indices = @transform_4, window_bounds = array<i64: 128, 128>}, {pipeline_mode = #tpu.pipeline_mode<synchronous>, transform_indices = @transform_5, window_bounds = array<i64: 1, 128>}, {transform_indices = @transform_6, window_bounds = array<i64: 8, 128>}]} {
    %c0_i32 = arith.constant 0 : i32
    %0 = arith.cmpi eq, %arg0, %c0_i32 : i32
    %1 = arith.extui %0 : i1 to i32
    %c0_i32_0 = arith.constant 0 : i32
    %2 = arith.cmpi ne, %1, %c0_i32_0 : i32
    scf.if %2 {
      %c0_45 = arith.constant 0 : index
      %c0_46 = arith.constant 0 : index
      %147 = vector.load %arg2[%c0_45, %c0_46] : memref<128x8xf32, #tpu.memory_space<vmem>>, vector<128x8xf32>
      %c0_47 = arith.constant 0 : index
      %c0_48 = arith.constant 0 : index
      %148 = vector.load %arg3[%c0_47, %c0_48] : memref<128x128xf32, #tpu.memory_space<vmem>>, vector<8x128xf32>
      %cst_49 = arith.constant dense<0.000000e+00> : vector<128x128xf32>
      %149 = tpu.matmul %147, %148, %cst_49 {dimension_numbers = #tpu.dot_dimension_numbers<[1], [0], [0], [1], [0, 0, 1, 1], [], []>} : vector<128x8xf32>, vector<8x128xf32>, vector<128x128xf32> -> vector<128x128xf32>
      %c0_50 = arith.constant 0 : index
      %c0_51 = arith.constant 0 : index
      %150 = vector.load %arg8[%c0_50, %c0_51] : memref<2048x128xf32, #tpu.memory_space<vmem>>, vector<128x128xf32>
      tpu.vector_store %arg8[%c0_50, %c0_51], %149 {strides = array<i32>} : memref<2048x128xf32, #tpu.memory_space<vmem>>, vector<128x128xf32>,
      %c0_52 = arith.constant 0 : index
      %c0_53 = arith.constant 0 : index
      %151 = vector.load %arg2[%c0_52, %c0_53] : memref<128x8xf32, #tpu.memory_space<vmem>>, vector<128x8xf32>
      %c8 = arith.constant 8 : index
      %c0_54 = arith.constant 0 : index
      %152 = vector.load %arg3[%c8, %c0_54] : memref<128x128xf32, #tpu.memory_space<vmem>>, vector<8x128xf32>
      %cst_55 = arith.constant dense<0.000000e+00> : vector<128x128xf32>
      %153 = tpu.matmul %151, %152, %cst_55 {dimension_numbers = #tpu.dot_dimension_numbers<[1], [0], [0], [1], [0, 0, 1, 1], [], []>} : vector<128x8xf32>, vector<8x128xf32>, vector<128x128xf32> -> vector<128x128xf32>
      %c128_56 = arith.constant 128 : index
      %c0_57 = arith.constant 0 : index
      %154 = vector.load %arg8[%c128_56, %c0_57] : memref<2048x128xf32, #tpu.memory_space<vmem>>, vector<128x128xf32>
      tpu.vector_store %arg8[%c128_56, %c0_57], %153 {strides = array<i32>} : memref<2048x128xf32, #tpu.memory_space<vmem>>, vector<128x128xf32>,
      %c0_58 = arith.constant 0 : index
      %c0_59 = arith.constant 0 : index
      %155 = vector.load %arg2[%c0_58, %c0_59] : memref<128x8xf32, #tpu.memory_space<vmem>>, vector<128x8xf32>
      %c16 = arith.constant 16 : index
      %c0_60 = arith.constant 0 : index
      %156 = vector.load %arg3[%c16, %c0_60] : memref<128x128xf32, #tpu.memory_space<vmem>>, vector<8x128xf32>
      %cst_61 = arith.constant dense<0.000000e+00> : vector<128x128xf32>
      %157 = tpu.matmul %155, %156, %cst_61 {dimension_numbers = #tpu.dot_dimension_numbers<[1], [0], [0], [1], [0, 0, 1, 1], [], []>} : vector<128x8xf32>, vector<8x128xf32>, vector<128x128xf32> -> vector<128x128xf32>
      %c256_62 = arith.constant 256 : index
      %c0_63 = arith.constant 0 : index
      %158 = vector.load %arg8[%c256_62, %c0_63] : memref<2048x128xf32, #tpu.memory_space<vmem>>, vector<128x128xf32>
      tpu.vector_store %arg8[%c256_62, %c0_63], %157 {strides = array<i32>} : memref<2048x128xf32, #tpu.memory_space<vmem>>, vector<128x128xf32>,
      %c0_64 = arith.constant 0 : index
      %c0_65 = arith.constant 0 : index
      %159 = vector.load %arg2[%c0_64, %c0_65] : memref<128x8xf32, #tpu.memory_space<vmem>>, vector<128x8xf32>
      %c24 = arith.constant 24 : index
      %c0_66 = arith.constant 0 : index
      %160 = vector.load %arg3[%c24, %c0_66] : memref<128x128xf32, #tpu.memory_space<vmem>>, vector<8x128xf32>
      %cst_67 = arith.constant dense<0.000000e+00> : vector<128x128xf32>
      %161 = tpu.matmul %159, %160, %cst_67 {dimension_numbers = #tpu.dot_dimension_numbers<[1], [0], [0], [1], [0, 0, 1, 1], [], []>} : vector<128x8xf32>, vector<8x128xf32>, vector<128x128xf32> -> vector<128x128xf32>
      %c384_68 = arith.constant 384 : index
      %c0_69 = arith.constant 0 : index
      %162 = vector.load %arg8[%c384_68, %c0_69] : memref<2048x128xf32, #tpu.memory_space<vmem>>, vector<128x128xf32>
      tpu.vector_store %arg8[%c384_68, %c0_69], %161 {strides = array<i32>} : memref<2048x128xf32, #tpu.memory_space<vmem>>, vector<128x128xf32>,
      %c0_70 = arith.constant 0 : index
      %c0_71 = arith.constant 0 : index
      %163 = vector.load %arg2[%c0_70, %c0_71] : memref<128x8xf32, #tpu.memory_space<vmem>>, vector<128x8xf32>
      %c32 = arith.constant 32 : index
      %c0_72 = arith.constant 0 : index
      %164 = vector.load %arg3[%c32, %c0_72] : memref<128x128xf32, #tpu.memory_space<vmem>>, vector<8x128xf32>
      %cst_73 = arith.constant dense<0.000000e+00> : vector<128x128xf32>
      %165 = tpu.matmul %163, %164, %cst_73 {dimension_numbers = #tpu.dot_dimension_numbers<[1], [0], [0], [1], [0, 0, 1, 1], [], []>} : vector<128x8xf32>, vector<8x128xf32>, vector<128x128xf32> -> vector<128x128xf32>
      %c512_74 = arith.constant 512 : index
      %c0_75 = arith.constant 0 : index
      %166 = vector.load %arg8[%c512_74, %c0_75] : memref<2048x128xf32, #tpu.memory_space<vmem>>, vector<128x128xf32>
      tpu.vector_store %arg8[%c512_74, %c0_75], %165 {strides = array<i32>} : memref<2048x128xf32, #tpu.memory_space<vmem>>, vector<128x128xf32>,
      %c0_76 = arith.constant 0 : index
      %c0_77 = arith.constant 0 : index
      %167 = vector.load %arg2[%c0_76, %c0_77] : memref<128x8xf32, #tpu.memory_space<vmem>>, vector<128x8xf32>
      %c40 = arith.constant 40 : index
      %c0_78 = arith.constant 0 : index
      %168 = vector.load %arg3[%c40, %c0_78] : memref<128x128xf32, #tpu.memory_space<vmem>>, vector<8x128xf32>
      %cst_79 = arith.constant dense<0.000000e+00> : vector<128x128xf32>
      %169 = tpu.matmul %167, %168, %cst_79 {dimension_numbers = #tpu.dot_dimension_numbers<[1], [0], [0], [1], [0, 0, 1, 1], [], []>} : vector<128x8xf32>, vector<8x128xf32>, vector<128x128xf32> -> vector<128x128xf32>
      %c640_80 = arith.constant 640 : index
      %c0_81 = arith.constant 0 : index
      %170 = vector.load %arg8[%c640_80, %c0_81] : memref<2048x128xf32, #tpu.memory_space<vmem>>, vector<128x128xf32>
      tpu.vector_store %arg8[%c640_80, %c0_81], %169 {strides = array<i32>} : memref<2048x128xf32, #tpu.memory_space<vmem>>, vector<128x128xf32>,
      %c0_82 = arith.constant 0 : index
      %c0_83 = arith.constant 0 : index
      %171 = vector.load %arg2[%c0_82, %c0_83] : memref<128x8xf32, #tpu.memory_space<vmem>>, vector<128x8xf32>
      %c48 = arith.constant 48 : index
      %c0_84 = arith.constant 0 : index
      %172 = vector.load %arg3[%c48, %c0_84] : memref<128x128xf32, #tpu.memory_space<vmem>>, vector<8x128xf32>
      %cst_85 = arith.constant dense<0.000000e+00> : vector<128x128xf32>
      %173 = tpu.matmul %171, %172, %cst_85 {dimension_numbers = #tpu.dot_dimension_numbers<[1], [0], [0], [1], [0, 0, 1, 1], [], []>} : vector<128x8xf32>, vector<8x128xf32>, vector<128x128xf32> -> vector<128x128xf32>
      %c768_86 = arith.constant 768 : index
      %c0_87 = arith.constant 0 : index
      %174 = vector.load %arg8[%c768_86, %c0_87] : memref<2048x128xf32, #tpu.memory_space<vmem>>, vector<128x128xf32>
      tpu.vector_store %arg8[%c768_86, %c0_87], %173 {strides = array<i32>} : memref<2048x128xf32, #tpu.memory_space<vmem>>, vector<128x128xf32>,
      %c0_88 = arith.constant 0 : index
      %c0_89 = arith.constant 0 : index
      %175 = vector.load %arg2[%c0_88, %c0_89] : memref<128x8xf32, #tpu.memory_space<vmem>>, vector<128x8xf32>
      %c56 = arith.constant 56 : index
      %c0_90 = arith.constant 0 : index
      %176 = vector.load %arg3[%c56, %c0_90] : memref<128x128xf32, #tpu.memory_space<vmem>>, vector<8x128xf32>
      %cst_91 = arith.constant dense<0.000000e+00> : vector<128x128xf32>
      %177 = tpu.matmul %175, %176, %cst_91 {dimension_numbers = #tpu.dot_dimension_numbers<[1], [0], [0], [1], [0, 0, 1, 1], [], []>} : vector<128x8xf32>, vector<8x128xf32>, vector<128x128xf32> -> vector<128x128xf32>
      %c896_92 = arith.constant 896 : index
      %c0_93 = arith.constant 0 : index
      %178 = vector.load %arg8[%c896_92, %c0_93] : memref<2048x128xf32, #tpu.memory_space<vmem>>, vector<128x128xf32>
      tpu.vector_store %arg8[%c896_92, %c0_93], %177 {strides = array<i32>} : memref<2048x128xf32, #tpu.memory_space<vmem>>, vector<128x128xf32>,
      %c0_94 = arith.constant 0 : index
      %c0_95 = arith.constant 0 : index
      %179 = vector.load %arg2[%c0_94, %c0_95] : memref<128x8xf32, #tpu.memory_space<vmem>>, vector<128x8xf32>
      %c64 = arith.constant 64 : index
      %c0_96 = arith.constant 0 : index
      %180 = vector.load %arg3[%c64, %c0_96] : memref<128x128xf32, #tpu.memory_space<vmem>>, vector<8x128xf32>
      %cst_97 = arith.constant dense<0.000000e+00> : vector<128x128xf32>
      %181 = tpu.matmul %179, %180, %cst_97 {dimension_numbers = #tpu.dot_dimension_numbers<[1], [0], [0], [1], [0, 0, 1, 1], [], []>} : vector<128x8xf32>, vector<8x128xf32>, vector<128x128xf32> -> vector<128x128xf32>
      %c1024_98 = arith.constant 1024 : index
      %c0_99 = arith.constant 0 : index
      %182 = vector.load %arg8[%c1024_98, %c0_99] : memref<2048x128xf32, #tpu.memory_space<vmem>>, vector<128x128xf32>
      tpu.vector_store %arg8[%c1024_98, %c0_99], %181 {strides = array<i32>} : memref<2048x128xf32, #tpu.memory_space<vmem>>, vector<128x128xf32>,
      %c0_100 = arith.constant 0 : index
      %c0_101 = arith.constant 0 : index
      %183 = vector.load %arg2[%c0_100, %c0_101] : memref<128x8xf32, #tpu.memory_space<vmem>>, vector<128x8xf32>
      %c72 = arith.constant 72 : index
      %c0_102 = arith.constant 0 : index
      %184 = vector.load %arg3[%c72, %c0_102] : memref<128x128xf32, #tpu.memory_space<vmem>>, vector<8x128xf32>
      %cst_103 = arith.constant dense<0.000000e+00> : vector<128x128xf32>
      %185 = tpu.matmul %183, %184, %cst_103 {dimension_numbers = #tpu.dot_dimension_numbers<[1], [0], [0], [1], [0, 0, 1, 1], [], []>} : vector<128x8xf32>, vector<8x128xf32>, vector<128x128xf32> -> vector<128x128xf32>
      %c1152_104 = arith.constant 1152 : index
      %c0_105 = arith.constant 0 : index
      %186 = vector.load %arg8[%c1152_104, %c0_105] : memref<2048x128xf32, #tpu.memory_space<vmem>>, vector<128x128xf32>
      tpu.vector_store %arg8[%c1152_104, %c0_105], %185 {strides = array<i32>} : memref<2048x128xf32, #tpu.memory_space<vmem>>, vector<128x128xf32>,
      %c0_106 = arith.constant 0 : index
      %c0_107 = arith.constant 0 : index
      %187 = vector.load %arg2[%c0_106, %c0_107] : memref<128x8xf32, #tpu.memory_space<vmem>>, vector<128x8xf32>
      %c80 = arith.constant 80 : index
      %c0_108 = arith.constant 0 : index
      %188 = vector.load %arg3[%c80, %c0_108] : memref<128x128xf32, #tpu.memory_space<vmem>>, vector<8x128xf32>
      %cst_109 = arith.constant dense<0.000000e+00> : vector<128x128xf32>
      %189 = tpu.matmul %187, %188, %cst_109 {dimension_numbers = #tpu.dot_dimension_numbers<[1], [0], [0], [1], [0, 0, 1, 1], [], []>} : vector<128x8xf32>, vector<8x128xf32>, vector<128x128xf32> -> vector<128x128xf32>
      %c1280_110 = arith.constant 1280 : index
      %c0_111 = arith.constant 0 : index
      %190 = vector.load %arg8[%c1280_110, %c0_111] : memref<2048x128xf32, #tpu.memory_space<vmem>>, vector<128x128xf32>
      tpu.vector_store %arg8[%c1280_110, %c0_111], %189 {strides = array<i32>} : memref<2048x128xf32, #tpu.memory_space<vmem>>, vector<128x128xf32>,
      %c0_112 = arith.constant 0 : index
      %c0_113 = arith.constant 0 : index
      %191 = vector.load %arg2[%c0_112, %c0_113] : memref<128x8xf32, #tpu.memory_space<vmem>>, vector<128x8xf32>
      %c88 = arith.constant 88 : index
      %c0_114 = arith.constant 0 : index
      %192 = vector.load %arg3[%c88, %c0_114] : memref<128x128xf32, #tpu.memory_space<vmem>>, vector<8x128xf32>
      %cst_115 = arith.constant dense<0.000000e+00> : vector<128x128xf32>
      %193 = tpu.matmul %191, %192, %cst_115 {dimension_numbers = #tpu.dot_dimension_numbers<[1], [0], [0], [1], [0, 0, 1, 1], [], []>} : vector<128x8xf32>, vector<8x128xf32>, vector<128x128xf32> -> vector<128x128xf32>
      %c1408_116 = arith.constant 1408 : index
      %c0_117 = arith.constant 0 : index
      %194 = vector.load %arg8[%c1408_116, %c0_117] : memref<2048x128xf32, #tpu.memory_space<vmem>>, vector<128x128xf32>
      tpu.vector_store %arg8[%c1408_116, %c0_117], %193 {strides = array<i32>} : memref<2048x128xf32, #tpu.memory_space<vmem>>, vector<128x128xf32>,
      %c0_118 = arith.constant 0 : index
      %c0_119 = arith.constant 0 : index
      %195 = vector.load %arg2[%c0_118, %c0_119] : memref<128x8xf32, #tpu.memory_space<vmem>>, vector<128x8xf32>
      %c96 = arith.constant 96 : index
      %c0_120 = arith.constant 0 : index
      %196 = vector.load %arg3[%c96, %c0_120] : memref<128x128xf32, #tpu.memory_space<vmem>>, vector<8x128xf32>
      %cst_121 = arith.constant dense<0.000000e+00> : vector<128x128xf32>
      %197 = tpu.matmul %195, %196, %cst_121 {dimension_numbers = #tpu.dot_dimension_numbers<[1], [0], [0], [1], [0, 0, 1, 1], [], []>} : vector<128x8xf32>, vector<8x128xf32>, vector<128x128xf32> -> vector<128x128xf32>
      %c1536_122 = arith.constant 1536 : index
      %c0_123 = arith.constant 0 : index
      %198 = vector.load %arg8[%c1536_122, %c0_123] : memref<2048x128xf32, #tpu.memory_space<vmem>>, vector<128x128xf32>
      tpu.vector_store %arg8[%c1536_122, %c0_123], %197 {strides = array<i32>} : memref<2048x128xf32, #tpu.memory_space<vmem>>, vector<128x128xf32>,
      %c0_124 = arith.constant 0 : index
      %c0_125 = arith.constant 0 : index
      %199 = vector.load %arg2[%c0_124, %c0_125] : memref<128x8xf32, #tpu.memory_space<vmem>>, vector<128x8xf32>
      %c104 = arith.constant 104 : index
      %c0_126 = arith.constant 0 : index
      %200 = vector.load %arg3[%c104, %c0_126] : memref<128x128xf32, #tpu.memory_space<vmem>>, vector<8x128xf32>
      %cst_127 = arith.constant dense<0.000000e+00> : vector<128x128xf32>
      %201 = tpu.matmul %199, %200, %cst_127 {dimension_numbers = #tpu.dot_dimension_numbers<[1], [0], [0], [1], [0, 0, 1, 1], [], []>} : vector<128x8xf32>, vector<8x128xf32>, vector<128x128xf32> -> vector<128x128xf32>
      %c1664_128 = arith.constant 1664 : index
      %c0_129 = arith.constant 0 : index
      %202 = vector.load %arg8[%c1664_128, %c0_129] : memref<2048x128xf32, #tpu.memory_space<vmem>>, vector<128x128xf32>
      tpu.vector_store %arg8[%c1664_128, %c0_129], %201 {strides = array<i32>} : memref<2048x128xf32, #tpu.memory_space<vmem>>, vector<128x128xf32>,
      %c0_130 = arith.constant 0 : index
      %c0_131 = arith.constant 0 : index
      %203 = vector.load %arg2[%c0_130, %c0_131] : memref<128x8xf32, #tpu.memory_space<vmem>>, vector<128x8xf32>
      %c112 = arith.constant 112 : index
      %c0_132 = arith.constant 0 : index
      %204 = vector.load %arg3[%c112, %c0_132] : memref<128x128xf32, #tpu.memory_space<vmem>>, vector<8x128xf32>
      %cst_133 = arith.constant dense<0.000000e+00> : vector<128x128xf32>
      %205 = tpu.matmul %203, %204, %cst_133 {dimension_numbers = #tpu.dot_dimension_numbers<[1], [0], [0], [1], [0, 0, 1, 1], [], []>} : vector<128x8xf32>, vector<8x128xf32>, vector<128x128xf32> -> vector<128x128xf32>
      %c1792_134 = arith.constant 1792 : index
      %c0_135 = arith.constant 0 : index
      %206 = vector.load %arg8[%c1792_134, %c0_135] : memref<2048x128xf32, #tpu.memory_space<vmem>>, vector<128x128xf32>
      tpu.vector_store %arg8[%c1792_134, %c0_135], %205 {strides = array<i32>} : memref<2048x128xf32, #tpu.memory_space<vmem>>, vector<128x128xf32>,
      %c0_136 = arith.constant 0 : index
      %c0_137 = arith.constant 0 : index
      %207 = vector.load %arg2[%c0_136, %c0_137] : memref<128x8xf32, #tpu.memory_space<vmem>>, vector<128x8xf32>
      %c120 = arith.constant 120 : index
      %c0_138 = arith.constant 0 : index
      %208 = vector.load %arg3[%c120, %c0_138] : memref<128x128xf32, #tpu.memory_space<vmem>>, vector<8x128xf32>
      %cst_139 = arith.constant dense<0.000000e+00> : vector<128x128xf32>
      %209 = tpu.matmul %207, %208, %cst_139 {dimension_numbers = #tpu.dot_dimension_numbers<[1], [0], [0], [1], [0, 0, 1, 1], [], []>} : vector<128x8xf32>, vector<8x128xf32>, vector<128x128xf32> -> vector<128x128xf32>
      %c1920_140 = arith.constant 1920 : index
      %c0_141 = arith.constant 0 : index
      %210 = vector.load %arg8[%c1920_140, %c0_141] : memref<2048x128xf32, #tpu.memory_space<vmem>>, vector<128x128xf32>
      tpu.vector_store %arg8[%c1920_140, %c0_141], %209 {strides = array<i32>} : memref<2048x128xf32, #tpu.memory_space<vmem>>, vector<128x128xf32>,
    } else {
    }
    %c0 = arith.constant 0 : index
    %c0_1 = arith.constant 0 : index
    %3 = vector.load %arg1[%c0, %c0_1] : memref<8x16xi32, #tpu.memory_space<vmem>>, vector<8x16xi32>
    %4 = tpu.iota {dimensions = array<i32: 1>} : vector<8x128xi32>
    %cst = arith.constant 0.000000e+00 : f32
    %5 = vector.broadcast %cst : f32 to vector<8x128xf32>
    %6 = vector.extract_strided_slice %3 {offsets = [0, 0], sizes = [8, 1], strides = [1, 1]} : vector<8x16xi32> to vector<8x1xi32>
    %7 = vector.broadcast %6 : vector<8x1xi32> to vector<8x128xi32>
    %8 = arith.cmpi eq, %4, %7 : vector<8x128xi32>
    %9 = arith.extui %8 : vector<8x128xi1> to vector<8x128xi32>
    %10 = arith.sitofp %9 : vector<8x128xi32> to vector<8x128xf32>
    %c0_2 = arith.constant 0 : index
    %c0_3 = arith.constant 0 : index
    %11 = vector.load %arg8[%c0_2, %c0_3] : memref<2048x128xf32, #tpu.memory_space<vmem>>, vector<128x128xf32>
    %cst_4 = arith.constant dense<0.000000e+00> : vector<8x128xf32>
    %12 = tpu.matmul %10, %11, %cst_4 {dimension_numbers = #tpu.dot_dimension_numbers<[1], [0], [0], [1], [0, 0, 1, 1], [], []>} : vector<8x128xf32>, vector<128x128xf32>, vector<8x128xf32> -> vector<8x128xf32>
    %13 = arith.addf %5, %12 : vector<8x128xf32>
    %14 = vector.extract_strided_slice %3 {offsets = [0, 1], sizes = [8, 1], strides = [1, 1]} : vector<8x16xi32> to vector<8x1xi32>
    %15 = vector.broadcast %14 : vector<8x1xi32> to vector<8x128xi32>
    %16 = arith.cmpi eq, %4, %15 : vector<8x128xi32>
    %17 = arith.extui %16 : vector<8x128xi1> to vector<8x128xi32>
    %18 = arith.sitofp %17 : vector<8x128xi32> to vector<8x128xf32>
    %c128 = arith.constant 128 : index
    %c0_5 = arith.constant 0 : index
    %19 = vector.load %arg8[%c128, %c0_5] : memref<2048x128xf32, #tpu.memory_space<vmem>>, vector<128x128xf32>
    %cst_6 = arith.constant dense<0.000000e+00> : vector<8x128xf32>
    %20 = tpu.matmul %18, %19, %cst_6 {dimension_numbers = #tpu.dot_dimension_numbers<[1], [0], [0], [1], [0, 0, 1, 1], [], []>} : vector<8x128xf32>, vector<128x128xf32>, vector<8x128xf32> -> vector<8x128xf32>
    %21 = arith.addf %13, %20 : vector<8x128xf32>
    %22 = vector.extract_strided_slice %3 {offsets = [0, 2], sizes = [8, 1], strides = [1, 1]} : vector<8x16xi32> to vector<8x1xi32>
    %23 = vector.broadcast %22 : vector<8x1xi32> to vector<8x128xi32>
    %24 = arith.cmpi eq, %4, %23 : vector<8x128xi32>
    %25 = arith.extui %24 : vector<8x128xi1> to vector<8x128xi32>
    %26 = arith.sitofp %25 : vector<8x128xi32> to vector<8x128xf32>
    %c256 = arith.constant 256 : index
    %c0_7 = arith.constant 0 : index
    %27 = vector.load %arg8[%c256, %c0_7] : memref<2048x128xf32, #tpu.memory_space<vmem>>, vector<128x128xf32>
    %cst_8 = arith.constant dense<0.000000e+00> : vector<8x128xf32>
    %28 = tpu.matmul %26, %27, %cst_8 {dimension_numbers = #tpu.dot_dimension_numbers<[1], [0], [0], [1], [0, 0, 1, 1], [], []>} : vector<8x128xf32>, vector<128x128xf32>, vector<8x128xf32> -> vector<8x128xf32>
    %29 = arith.addf %21, %28 : vector<8x128xf32>
    %30 = vector.extract_strided_slice %3 {offsets = [0, 3], sizes = [8, 1], strides = [1, 1]} : vector<8x16xi32> to vector<8x1xi32>
    %31 = vector.broadcast %30 : vector<8x1xi32> to vector<8x128xi32>
    %32 = arith.cmpi eq, %4, %31 : vector<8x128xi32>
    %33 = arith.extui %32 : vector<8x128xi1> to vector<8x128xi32>
    %34 = arith.sitofp %33 : vector<8x128xi32> to vector<8x128xf32>
    %c384 = arith.constant 384 : index
    %c0_9 = arith.constant 0 : index
    %35 = vector.load %arg8[%c384, %c0_9] : memref<2048x128xf32, #tpu.memory_space<vmem>>, vector<128x128xf32>
    %cst_10 = arith.constant dense<0.000000e+00> : vector<8x128xf32>
    %36 = tpu.matmul %34, %35, %cst_10 {dimension_numbers = #tpu.dot_dimension_numbers<[1], [0], [0], [1], [0, 0, 1, 1], [], []>} : vector<8x128xf32>, vector<128x128xf32>, vector<8x128xf32> -> vector<8x128xf32>
    %37 = arith.addf %29, %36 : vector<8x128xf32>
    %38 = vector.extract_strided_slice %3 {offsets = [0, 4], sizes = [8, 1], strides = [1, 1]} : vector<8x16xi32> to vector<8x1xi32>
    %39 = vector.broadcast %38 : vector<8x1xi32> to vector<8x128xi32>
    %40 = arith.cmpi eq, %4, %39 : vector<8x128xi32>
    %41 = arith.extui %40 : vector<8x128xi1> to vector<8x128xi32>
    %42 = arith.sitofp %41 : vector<8x128xi32> to vector<8x128xf32>
    %c512 = arith.constant 512 : index
    %c0_11 = arith.constant 0 : index
    %43 = vector.load %arg8[%c512, %c0_11] : memref<2048x128xf32, #tpu.memory_space<vmem>>, vector<128x128xf32>
    %cst_12 = arith.constant dense<0.000000e+00> : vector<8x128xf32>
    %44 = tpu.matmul %42, %43, %cst_12 {dimension_numbers = #tpu.dot_dimension_numbers<[1], [0], [0], [1], [0, 0, 1, 1], [], []>} : vector<8x128xf32>, vector<128x128xf32>, vector<8x128xf32> -> vector<8x128xf32>
    %45 = arith.addf %37, %44 : vector<8x128xf32>
    %46 = vector.extract_strided_slice %3 {offsets = [0, 5], sizes = [8, 1], strides = [1, 1]} : vector<8x16xi32> to vector<8x1xi32>
    %47 = vector.broadcast %46 : vector<8x1xi32> to vector<8x128xi32>
    %48 = arith.cmpi eq, %4, %47 : vector<8x128xi32>
    %49 = arith.extui %48 : vector<8x128xi1> to vector<8x128xi32>
    %50 = arith.sitofp %49 : vector<8x128xi32> to vector<8x128xf32>
    %c640 = arith.constant 640 : index
    %c0_13 = arith.constant 0 : index
    %51 = vector.load %arg8[%c640, %c0_13] : memref<2048x128xf32, #tpu.memory_space<vmem>>, vector<128x128xf32>
    %cst_14 = arith.constant dense<0.000000e+00> : vector<8x128xf32>
    %52 = tpu.matmul %50, %51, %cst_14 {dimension_numbers = #tpu.dot_dimension_numbers<[1], [0], [0], [1], [0, 0, 1, 1], [], []>} : vector<8x128xf32>, vector<128x128xf32>, vector<8x128xf32> -> vector<8x128xf32>
    %53 = arith.addf %45, %52 : vector<8x128xf32>
    %54 = vector.extract_strided_slice %3 {offsets = [0, 6], sizes = [8, 1], strides = [1, 1]} : vector<8x16xi32> to vector<8x1xi32>
    %55 = vector.broadcast %54 : vector<8x1xi32> to vector<8x128xi32>
    %56 = arith.cmpi eq, %4, %55 : vector<8x128xi32>
    %57 = arith.extui %56 : vector<8x128xi1> to vector<8x128xi32>
    %58 = arith.sitofp %57 : vector<8x128xi32> to vector<8x128xf32>
    %c768 = arith.constant 768 : index
    %c0_15 = arith.constant 0 : index
    %59 = vector.load %arg8[%c768, %c0_15] : memref<2048x128xf32, #tpu.memory_space<vmem>>, vector<128x128xf32>
    %cst_16 = arith.constant dense<0.000000e+00> : vector<8x128xf32>
    %60 = tpu.matmul %58, %59, %cst_16 {dimension_numbers = #tpu.dot_dimension_numbers<[1], [0], [0], [1], [0, 0, 1, 1], [], []>} : vector<8x128xf32>, vector<128x128xf32>, vector<8x128xf32> -> vector<8x128xf32>
    %61 = arith.addf %53, %60 : vector<8x128xf32>
    %62 = vector.extract_strided_slice %3 {offsets = [0, 7], sizes = [8, 1], strides = [1, 1]} : vector<8x16xi32> to vector<8x1xi32>
    %63 = vector.broadcast %62 : vector<8x1xi32> to vector<8x128xi32>
    %64 = arith.cmpi eq, %4, %63 : vector<8x128xi32>
    %65 = arith.extui %64 : vector<8x128xi1> to vector<8x128xi32>
    %66 = arith.sitofp %65 : vector<8x128xi32> to vector<8x128xf32>
    %c896 = arith.constant 896 : index
    %c0_17 = arith.constant 0 : index
    %67 = vector.load %arg8[%c896, %c0_17] : memref<2048x128xf32, #tpu.memory_space<vmem>>, vector<128x128xf32>
    %cst_18 = arith.constant dense<0.000000e+00> : vector<8x128xf32>
    %68 = tpu.matmul %66, %67, %cst_18 {dimension_numbers = #tpu.dot_dimension_numbers<[1], [0], [0], [1], [0, 0, 1, 1], [], []>} : vector<8x128xf32>, vector<128x128xf32>, vector<8x128xf32> -> vector<8x128xf32>
    %69 = arith.addf %61, %68 : vector<8x128xf32>
    %70 = vector.extract_strided_slice %3 {offsets = [0, 8], sizes = [8, 1], strides = [1, 1]} : vector<8x16xi32> to vector<8x1xi32>
    %71 = vector.broadcast %70 : vector<8x1xi32> to vector<8x128xi32>
    %72 = arith.cmpi eq, %4, %71 : vector<8x128xi32>
    %73 = arith.extui %72 : vector<8x128xi1> to vector<8x128xi32>
    %74 = arith.sitofp %73 : vector<8x128xi32> to vector<8x128xf32>
    %c1024 = arith.constant 1024 : index
    %c0_19 = arith.constant 0 : index
    %75 = vector.load %arg8[%c1024, %c0_19] : memref<2048x128xf32, #tpu.memory_space<vmem>>, vector<128x128xf32>
    %cst_20 = arith.constant dense<0.000000e+00> : vector<8x128xf32>
    %76 = tpu.matmul %74, %75, %cst_20 {dimension_numbers = #tpu.dot_dimension_numbers<[1], [0], [0], [1], [0, 0, 1, 1], [], []>} : vector<8x128xf32>, vector<128x128xf32>, vector<8x128xf32> -> vector<8x128xf32>
    %77 = arith.addf %69, %76 : vector<8x128xf32>
    %78 = vector.extract_strided_slice %3 {offsets = [0, 9], sizes = [8, 1], strides = [1, 1]} : vector<8x16xi32> to vector<8x1xi32>
    %79 = vector.broadcast %78 : vector<8x1xi32> to vector<8x128xi32>
    %80 = arith.cmpi eq, %4, %79 : vector<8x128xi32>
    %81 = arith.extui %80 : vector<8x128xi1> to vector<8x128xi32>
    %82 = arith.sitofp %81 : vector<8x128xi32> to vector<8x128xf32>
    %c1152 = arith.constant 1152 : index
    %c0_21 = arith.constant 0 : index
    %83 = vector.load %arg8[%c1152, %c0_21] : memref<2048x128xf32, #tpu.memory_space<vmem>>, vector<128x128xf32>
    %cst_22 = arith.constant dense<0.000000e+00> : vector<8x128xf32>
    %84 = tpu.matmul %82, %83, %cst_22 {dimension_numbers = #tpu.dot_dimension_numbers<[1], [0], [0], [1], [0, 0, 1, 1], [], []>} : vector<8x128xf32>, vector<128x128xf32>, vector<8x128xf32> -> vector<8x128xf32>
    %85 = arith.addf %77, %84 : vector<8x128xf32>
    %86 = vector.extract_strided_slice %3 {offsets = [0, 10], sizes = [8, 1], strides = [1, 1]} : vector<8x16xi32> to vector<8x1xi32>
    %87 = vector.broadcast %86 : vector<8x1xi32> to vector<8x128xi32>
    %88 = arith.cmpi eq, %4, %87 : vector<8x128xi32>
    %89 = arith.extui %88 : vector<8x128xi1> to vector<8x128xi32>
    %90 = arith.sitofp %89 : vector<8x128xi32> to vector<8x128xf32>
    %c1280 = arith.constant 1280 : index
    %c0_23 = arith.constant 0 : index
    %91 = vector.load %arg8[%c1280, %c0_23] : memref<2048x128xf32, #tpu.memory_space<vmem>>, vector<128x128xf32>
    %cst_24 = arith.constant dense<0.000000e+00> : vector<8x128xf32>
    %92 = tpu.matmul %90, %91, %cst_24 {dimension_numbers = #tpu.dot_dimension_numbers<[1], [0], [0], [1], [0, 0, 1, 1], [], []>} : vector<8x128xf32>, vector<128x128xf32>, vector<8x128xf32> -> vector<8x128xf32>
    %93 = arith.addf %85, %92 : vector<8x128xf32>
    %94 = vector.extract_strided_slice %3 {offsets = [0, 11], sizes = [8, 1], strides = [1, 1]} : vector<8x16xi32> to vector<8x1xi32>
    %95 = vector.broadcast %94 : vector<8x1xi32> to vector<8x128xi32>
    %96 = arith.cmpi eq, %4, %95 : vector<8x128xi32>
    %97 = arith.extui %96 : vector<8x128xi1> to vector<8x128xi32>
    %98 = arith.sitofp %97 : vector<8x128xi32> to vector<8x128xf32>
    %c1408 = arith.constant 1408 : index
    %c0_25 = arith.constant 0 : index
    %99 = vector.load %arg8[%c1408, %c0_25] : memref<2048x128xf32, #tpu.memory_space<vmem>>, vector<128x128xf32>
    %cst_26 = arith.constant dense<0.000000e+00> : vector<8x128xf32>
    %100 = tpu.matmul %98, %99, %cst_26 {dimension_numbers = #tpu.dot_dimension_numbers<[1], [0], [0], [1], [0, 0, 1, 1], [], []>} : vector<8x128xf32>, vector<128x128xf32>, vector<8x128xf32> -> vector<8x128xf32>
    %101 = arith.addf %93, %100 : vector<8x128xf32>
    %102 = vector.extract_strided_slice %3 {offsets = [0, 12], sizes = [8, 1], strides = [1, 1]} : vector<8x16xi32> to vector<8x1xi32>
    %103 = vector.broadcast %102 : vector<8x1xi32> to vector<8x128xi32>
    %104 = arith.cmpi eq, %4, %103 : vector<8x128xi32>
    %105 = arith.extui %104 : vector<8x128xi1> to vector<8x128xi32>
    %106 = arith.sitofp %105 : vector<8x128xi32> to vector<8x128xf32>
    %c1536 = arith.constant 1536 : index
    %c0_27 = arith.constant 0 : index
    %107 = vector.load %arg8[%c1536, %c0_27] : memref<2048x128xf32, #tpu.memory_space<vmem>>, vector<128x128xf32>
    %cst_28 = arith.constant dense<0.000000e+00> : vector<8x128xf32>
    %108 = tpu.matmul %106, %107, %cst_28 {dimension_numbers = #tpu.dot_dimension_numbers<[1], [0], [0], [1], [0, 0, 1, 1], [], []>} : vector<8x128xf32>, vector<128x128xf32>, vector<8x128xf32> -> vector<8x128xf32>
    %109 = arith.addf %101, %108 : vector<8x128xf32>
    %110 = vector.extract_strided_slice %3 {offsets = [0, 13], sizes = [8, 1], strides = [1, 1]} : vector<8x16xi32> to vector<8x1xi32>
    %111 = vector.broadcast %110 : vector<8x1xi32> to vector<8x128xi32>
    %112 = arith.cmpi eq, %4, %111 : vector<8x128xi32>
    %113 = arith.extui %112 : vector<8x128xi1> to vector<8x128xi32>
    %114 = arith.sitofp %113 : vector<8x128xi32> to vector<8x128xf32>
    %c1664 = arith.constant 1664 : index
    %c0_29 = arith.constant 0 : index
    %115 = vector.load %arg8[%c1664, %c0_29] : memref<2048x128xf32, #tpu.memory_space<vmem>>, vector<128x128xf32>
    %cst_30 = arith.constant dense<0.000000e+00> : vector<8x128xf32>
    %116 = tpu.matmul %114, %115, %cst_30 {dimension_numbers = #tpu.dot_dimension_numbers<[1], [0], [0], [1], [0, 0, 1, 1], [], []>} : vector<8x128xf32>, vector<128x128xf32>, vector<8x128xf32> -> vector<8x128xf32>
    %117 = arith.addf %109, %116 : vector<8x128xf32>
    %118 = vector.extract_strided_slice %3 {offsets = [0, 14], sizes = [8, 1], strides = [1, 1]} : vector<8x16xi32> to vector<8x1xi32>
    %119 = vector.broadcast %118 : vector<8x1xi32> to vector<8x128xi32>
    %120 = arith.cmpi eq, %4, %119 : vector<8x128xi32>
    %121 = arith.extui %120 : vector<8x128xi1> to vector<8x128xi32>
    %122 = arith.sitofp %121 : vector<8x128xi32> to vector<8x128xf32>
    %c1792 = arith.constant 1792 : index
    %c0_31 = arith.constant 0 : index
    %123 = vector.load %arg8[%c1792, %c0_31] : memref<2048x128xf32, #tpu.memory_space<vmem>>, vector<128x128xf32>
    %cst_32 = arith.constant dense<0.000000e+00> : vector<8x128xf32>
    %124 = tpu.matmul %122, %123, %cst_32 {dimension_numbers = #tpu.dot_dimension_numbers<[1], [0], [0], [1], [0, 0, 1, 1], [], []>} : vector<8x128xf32>, vector<128x128xf32>, vector<8x128xf32> -> vector<8x128xf32>
    %125 = arith.addf %117, %124 : vector<8x128xf32>
    %126 = vector.extract_strided_slice %3 {offsets = [0, 15], sizes = [8, 1], strides = [1, 1]} : vector<8x16xi32> to vector<8x1xi32>
    %127 = vector.broadcast %126 : vector<8x1xi32> to vector<8x128xi32>
    %128 = arith.cmpi eq, %4, %127 : vector<8x128xi32>
    %129 = arith.extui %128 : vector<8x128xi1> to vector<8x128xi32>
    %130 = arith.sitofp %129 : vector<8x128xi32> to vector<8x128xf32>
    %c1920 = arith.constant 1920 : index
    %c0_33 = arith.constant 0 : index
    %131 = vector.load %arg8[%c1920, %c0_33] : memref<2048x128xf32, #tpu.memory_space<vmem>>, vector<128x128xf32>
    %cst_34 = arith.constant dense<0.000000e+00> : vector<8x128xf32>
    %132 = tpu.matmul %130, %131, %cst_34 {dimension_numbers = #tpu.dot_dimension_numbers<[1], [0], [0], [1], [0, 0, 1, 1], [], []>} : vector<8x128xf32>, vector<128x128xf32>, vector<8x128xf32> -> vector<8x128xf32>
    %133 = arith.addf %125, %132 : vector<8x128xf32>
    %c0_35 = arith.constant 0 : index
    %c0_36 = arith.constant 0 : index
    %134 = vector.load %arg4[%c0_35, %c0_36] : memref<1x128xf32, #tpu.memory_space<vmem>>, vector<1x128xf32>
    %135 = vector.broadcast %134 : vector<1x128xf32> to vector<8x128xf32>
    %136 = arith.addf %133, %135 : vector<8x128xf32>
    %137 = arith.mulf %136, %136 : vector<8x128xf32>
    %138 = arith.mulf %137, %136 : vector<8x128xf32>
    %c0_37 = arith.constant 0 : index
    %c0_38 = arith.constant 0 : index
    %139 = vector.load %arg5[%c0_37, %c0_38] : memref<128x128xf32, #tpu.memory_space<vmem>>, vector<128x128xf32>
    %cst_39 = arith.constant dense<0.000000e+00> : vector<8x128xf32>
    %140 = tpu.matmul %138, %139, %cst_39 {dimension_numbers = #tpu.dot_dimension_numbers<[1], [0], [0], [1], [0, 0, 1, 1], [], []>} : vector<8x128xf32>, vector<128x128xf32>, vector<8x128xf32> -> vector<8x128xf32>
    %c0_40 = arith.constant 0 : index
    %c0_41 = arith.constant 0 : index
    %141 = vector.load %arg6[%c0_40, %c0_41] : memref<1x128xf32, #tpu.memory_space<vmem>>, vector<1x128xf32>
    %142 = vector.broadcast %141 : vector<1x128xf32> to vector<8x128xf32>
    %143 = arith.addf %140, %142 : vector<8x128xf32>
    %cst_42 = arith.constant 0.000000e+00 : f32
    %144 = vector.broadcast %cst_42 : f32 to vector<8x128xf32>
    %145 = arith.maximumf %143, %144 : vector<8x128xf32>
    %c0_43 = arith.constant 0 : index
    %c0_44 = arith.constant 0 : index
    %146 = vector.load %arg7[%c0_43, %c0_44] : memref<8x128xf32, #tpu.memory_space<vmem>>, vector<8x128xf32>
    tpu.vector_store %arg7[%c0_43, %c0_44], %145 {strides = array<i32>} : memref<8x128xf32, #tpu.memory_space<vmem>>, vector<8x128xf32>,
    return
  }
  func.func @transform_0(%arg0: i32) -> (i32, i32) {
    %c0_i32 = arith.constant 0 : i32
    %c0_i32_0 = arith.constant 0 : i32
    return %arg0, %c0_i32 : i32, i32
  }
  func.func @transform_1(%arg0: i32) -> (i32, i32) {
    %c0_i32 = arith.constant 0 : i32
    %c0_i32_0 = arith.constant 0 : i32
    %c0_i32_1 = arith.constant 0 : i32
    return %c0_i32, %c0_i32_0 : i32, i32
  }
  func.func @transform_2(%arg0: i32) -> (i32, i32) {
    %c0_i32 = arith.constant 0 : i32
    %c0_i32_0 = arith.constant 0 : i32
    %c0_i32_1 = arith.constant 0 : i32
    return %c0_i32, %c0_i32_0 : i32, i32
  }
  func.func @transform_3(%arg0: i32) -> (i32, i32) {
    %c0_i32 = arith.constant 0 : i32
    %c0_i32_0 = arith.constant 0 : i32
    %c0_i32_1 = arith.constant 0 : i32
    return %c0_i32, %c0_i32_0 : i32, i32
  }
  func.func @transform_4(%arg0: i32) -> (i32, i32) {
    %c0_i32 = arith.constant 0 : i32
    %c0_i32_0 = arith.constant 0 : i32
    %c0_i32_1 = arith.constant 0 : i32
    return %c0_i32, %c0_i32_0 : i32, i32
  }
  func.func @transform_5(%arg0: i32) -> (i32, i32) {
    %c0_i32 = arith.constant 0 : i32
    %c0_i32_0 = arith.constant 0 : i32
    %c0_i32_1 = arith.constant 0 : i32
    return %c0_i32, %c0_i32_0 : i32, i32
  }
  func.func @transform_6(%arg0: i32) -> (i32, i32) {
    %c0_i32 = arith.constant 0 : i32
    %c0_i32_0 = arith.constant 0 : i32
    return %arg0, %c0_i32 : i32, i32
  }
}

</mosaic_0001>

<bundles_post_ra>
// kernel: parser_forward.1
= control target key start
LH: loop header
LB: loop body
LE: loop exit
PB: predicated region body
PF: predicated region fallthrough
CT: control target
= control target key end

     0   :  { %vm44_vm0 = vcmask 64512   ;;  %s4875_s2 = inlined_call_operand.vmem [shape: f32[128,128], index: 2, kind: input, shape index: {}]   ;;  %s4876_s1 = inlined_call_operand.vmem [shape: f32[128,8], index: 1, kind: input, shape index: {}]   ;;  %s4877_s0 = inlined_call_operand.vmem [shape: s32[8,16], index: 0, kind: input, shape index: {}]   ;;  %s4878_s3 = inlined_call_operand.vmem [shape: f32[1,128], index: 3, kind: input, shape index: {}]   ;;  %s4879_s5 = inlined_call_operand.vmem [shape: f32[1,128], index: 5, kind: input, shape index: {}]   ;;  %s4880_s4 = inlined_call_operand.vmem [shape: f32[128,128], index: 4, kind: input, shape index: {}]   ;;  %s4881_s6 = inlined_call_operand.vmem [shape: f32[8,128], index: 6, kind: output, shape index: {}]  }
   0x1   :  { %v43_v0 = vld [vmem:[%s4875_s2] sm:$0xff]  ;;  %v3496_v2 = vld [vmem:[%s4876_s1 + $0x68] sm:$0xff]  ;;  %v3501_v3 = vld [vmem:[%s4876_s1 + $0x70] sm:$0xff] }
   0x2   :  { %v3491_v1 = vld [vmem:[%s4876_s1] sm:$0xff]  ;;  %108 = vmatpush.msra.mxu0 %v43_v0  ;;  %3394 = vmatpush.msra.mxu1 %v43_v0  ;;  %v3506_v4 = vld [vmem:[%s4876_s1 + $0x78] sm:$0xff]  ;;  %v336_v5 = vld [vmem:[%s4875_s2 + $0x10] sm:$0xff] }
   0x3   :  { %3395 = vmatpush.msra.mxu2 %v43_v0  ;;  %3396 = vmatpush.msra.mxu3 %v43_v0  ;;  %v482_v6 = vld [vmem:[%s4875_s2 + $0x18] sm:$0xff]  ;;  %v190_v7 = vld [vmem:[%s4875_s2 + $0x8] sm:$0xff]  ;;  %v920_v8 = vld [vmem:[%s4875_s2 + $0x30] sm:$0xff] }
   0x4   :  { %3106 = vmatmul.msk.f32.vlgmr.msra.gmra.mxu0 %vm44_vm0, %v3491_v1  ;;  %3119 = vmatmul.msk.f32.vlgmr.msra.gmra.mxu1 %vm44_vm0, %v3496_v2  ;;  %v1066_v9 = vld [vmem:[%s4875_s2 + $0x38] sm:$0xff]  ;;  %v774_v10 = vld [vmem:[%s4875_s2 + $0x28] sm:$0xff]  ;;  %v628_v12 = vld [vmem:[%s4875_s2 + $0x20] sm:$0xff] }
   0x5   :  { %3120 = vmatmul.msk.f32.vlgmr.msra.gmra.mxu2 %vm44_vm0, %v3501_v3  ;;  %3121 = vmatmul.msk.f32.vlgmr.msra.gmra.mxu3 %vm44_vm0, %v3506_v4  ;;  %v3537_v11 = vld [vmem:[%s4876_s1 + $0x8] sm:$0xff]  ;;  %v3553_v13 = vld [vmem:[%s4876_s1 + $0x10] sm:$0xff]  ;;  %v3566_v14 = vld [vmem:[%s4876_s1 + $0x18] sm:$0xff] }
   0x6   :  { %400 = vmatpush.msrb.mxu2 %v336_v5  ;;  %546 = vmatpush.msrb.mxu3 %v482_v6  ;;  %v3579_v15 = vld [vmem:[%s4876_s1 + $0x20] sm:$0xff]  ;;  %v3592_v16 = vld [vmem:[%s4876_s1 + $0x28] sm:$0xff]  ;;  %v3605_v17 = vld [vmem:[%s4876_s1 + $0x30] sm:$0xff] }
   0x7   :  { %254 = vmatpush.msrb.mxu1 %v190_v7  ;;  %692 = vmatpush.msrb.mxu0 %v628_v12  ;;  %v3618_v18 = vld [vmem:[%s4876_s1 + $0x38] sm:$0xff]  ;;  %v3631_v19 = vld [vmem:[%s4876_s1 + $0x40] sm:$0xff]  ;;  %v3644_v20 = vld [vmem:[%s4876_s1 + $0x48] sm:$0xff] }
   0x8   :  { %984 = vmatpush.msra.mxu2 %v920_v8  ;;  %1130 = vmatpush.msra.mxu3 %v1066_v9  ;;  %4892 = vst [vmem:[#allocation3_spill] sm:$0xff] %v3631_v19  ;;  %v3657_v21 = vld [vmem:[%s4876_s1 + $0x50] sm:$0xff]  ;;  %v3670_v22 = vld [vmem:[%s4876_s1 + $0x58] sm:$0xff]  ;;  %v3683_v23 = vld [vmem:[%s4876_s1 + $0x60] sm:$0xff] }
   0x9   :  { %838 = vmatpush.msra.mxu1 %v774_v10  ;;  %4893 = vst [vmem:[#allocation4_spill] sm:$0xff] %v3644_v20  ;;  %v1504_v24 = vld [vmem:[%s4875_s2 + $0x50] sm:$0xff]  ;;  %v1650_v25 = vld [vmem:[%s4875_s2 + $0x58] sm:$0xff]  ;;  %v1212_v26 = vld [vmem:[%s4875_s2 + $0x40] sm:$0xff] }
   0xa   :  { %4894 = vst [vmem:[#allocation5_spill] sm:$0xff] %v3657_v21  ;;  %v1358_v27 = vld [vmem:[%s4875_s2 + $0x48] sm:$0xff]  ;;  %1276 = vmatpush.msra.mxu0 %v1212_v26 }
   0xb   :  { %4895 = vst [vmem:[#allocation6_spill] sm:$0xff] %v3670_v22 }
   0xc   :  { %3107 = vmatmul.msk.f32.gmra.mxu0 %vm44_vm0, %v3537_v11  ;;  %3122 = vmatmul.msk.f32.vlgmr.msrb.gmra.mxu1 %vm44_vm0, %v3491_v1  ;;  %4896 = vst [vmem:[#allocation7_spill] sm:$0xff] %v3683_v23 }
   0xd   :  { %3138 = vmatmul.msk.f32.vlgmr.msrb.gmra.mxu2 %vm44_vm0, %v3491_v1  ;;  %3154 = vmatmul.msk.f32.vlgmr.msrb.gmra.mxu3 %vm44_vm0, %v3491_v1 }
   0xe   :  { %1568 = vmatpush.msrb.mxu2 %v1504_v24  ;;  %1714 = vmatpush.msrb.mxu3 %v1650_v25 }
   0xf   :  { %1422 = vmatpush.msrb.mxu1 %v1358_v27 }
  0x14   :  { %3108 = vmatmul.msk.f32.gmra.mxu0 %vm44_vm0, %v3553_v13  ;;  %3123 = vmatmul.msk.f32.gmra.mxu1 %vm44_vm0, %v3537_v11 }
  0x15   :  { %3139 = vmatmul.msk.f32.gmra.mxu2 %vm44_vm0, %v3537_v11  ;;  %3155 = vmatmul.msk.f32.gmra.mxu3 %vm44_vm0, %v3537_v11 }
  0x1c   :  { %3109 = vmatmul.msk.f32.gmra.mxu0 %vm44_vm0, %v3566_v14  ;;  %3124 = vmatmul.msk.f32.gmra.mxu1 %vm44_vm0, %v3553_v13 }
  0x1d   :  { %3140 = vmatmul.msk.f32.gmra.mxu2 %vm44_vm0, %v3553_v13  ;;  %3156 = vmatmul.msk.f32.gmra.mxu3 %vm44_vm0, %v3553_v13 }
  0x24   :  { %3110 = vmatmul.msk.f32.gmra.mxu0 %vm44_vm0, %v3579_v15  ;;  %3125 = vmatmul.msk.f32.gmra.mxu1 %vm44_vm0, %v3566_v14 }
  0x25   :  { %3141 = vmatmul.msk.f32.gmra.mxu2 %vm44_vm0, %v3566_v14  ;;  %3157 = vmatmul.msk.f32.gmra.mxu3 %vm44_vm0, %v3566_v14 }
  0x2c   :  { %3111 = vmatmul.msk.f32.gmra.mxu0 %vm44_vm0, %v3592_v16  ;;  %3126 = vmatmul.msk.f32.gmra.mxu1 %vm44_vm0, %v3579_v15 }
  0x2d   :  { %3142 = vmatmul.msk.f32.gmra.mxu2 %vm44_vm0, %v3579_v15  ;;  %3158 = vmatmul.msk.f32.gmra.mxu3 %vm44_vm0, %v3579_v15 }
  0x34   :  { %3112 = vmatmul.msk.f32.gmra.mxu0 %vm44_vm0, %v3605_v17  ;;  %3127 = vmatmul.msk.f32.gmra.mxu1 %vm44_vm0, %v3592_v16 }
  0x35   :  { %3143 = vmatmul.msk.f32.gmra.mxu2 %vm44_vm0, %v3592_v16  ;;  %3159 = vmatmul.msk.f32.gmra.mxu3 %vm44_vm0, %v3592_v16 }
  0x3c   :  { %3113 = vmatmul.msk.f32.gmra.mxu0 %vm44_vm0, %v3618_v18  ;;  %3128 = vmatmul.msk.f32.gmra.mxu1 %vm44_vm0, %v3605_v17 }
  0x3d   :  { %3144 = vmatmul.msk.f32.gmra.mxu2 %vm44_vm0, %v3605_v17  ;;  %3160 = vmatmul.msk.f32.gmra.mxu3 %vm44_vm0, %v3605_v17 }
  0x44   :  { %3114 = vmatmul.msk.f32.gmra.mxu0 %vm44_vm0, %v3631_v19  ;;  %3129 = vmatmul.msk.f32.gmra.mxu1 %vm44_vm0, %v3618_v18 }
  0x45   :  { %3145 = vmatmul.msk.f32.gmra.mxu2 %vm44_vm0, %v3618_v18  ;;  %3161 = vmatmul.msk.f32.gmra.mxu3 %vm44_vm0, %v3618_v18 }
  0x4c   :  { %3115 = vmatmul.msk.f32.gmra.mxu0 %vm44_vm0, %v3644_v20  ;;  %3130 = vmatmul.msk.f32.gmra.mxu1 %vm44_vm0, %v3631_v19 }
  0x4d   :  { %3146 = vmatmul.msk.f32.gmra.mxu2 %vm44_vm0, %v3631_v19  ;;  %3162 = vmatmul.msk.f32.gmra.mxu3 %vm44_vm0, %v3631_v19 }
  0x54   :  { %3116 = vmatmul.msk.f32.gmra.mxu0 %vm44_vm0, %v3657_v21  ;;  %3131 = vmatmul.msk.f32.gmra.mxu1 %vm44_vm0, %v3644_v20 }
  0x55   :  { %3147 = vmatmul.msk.f32.gmra.mxu2 %vm44_vm0, %v3644_v20  ;;  %3163 = vmatmul.msk.f32.gmra.mxu3 %vm44_vm0, %v3644_v20 }
  0x5c   :  { %3117 = vmatmul.msk.f32.gmra.mxu0 %vm44_vm0, %v3670_v22  ;;  %3132 = vmatmul.msk.f32.gmra.mxu1 %vm44_vm0, %v3657_v21 }
  0x5d   :  { %3148 = vmatmul.msk.f32.gmra.mxu2 %vm44_vm0, %v3657_v21  ;;  %3164 = vmatmul.msk.f32.gmra.mxu3 %vm44_vm0, %v3657_v21 }
  0x64   :  { %3118 = vmatmul.msk.f32.gmra.mxu0 %vm44_vm0, %v3683_v23  ;;  %3133 = vmatmul.msk.f32.gmra.mxu1 %vm44_vm0, %v3670_v22 }
  0x65   :  { %3149 = vmatmul.msk.f32.gmra.mxu2 %vm44_vm0, %v3670_v22  ;;  %3165 = vmatmul.msk.f32.gmra.mxu3 %vm44_vm0, %v3670_v22 }
  0x6c   :  { %3134 = vmatmul.msk.f32.gmra.mxu1 %vm44_vm0, %v3683_v23  ;;  %3170 = vmatmul.msk.f32.vlgmr.msrb.gmra.mxu0 %vm44_vm0, %v3491_v1 }
  0x6d   :  { %3150 = vmatmul.msk.f32.gmra.mxu2 %vm44_vm0, %v3683_v23  ;;  %3166 = vmatmul.msk.f32.gmra.mxu3 %vm44_vm0, %v3683_v23 }
  0x74   :  { %3135 = vmatmul.msk.f32.gmra.mxu1 %vm44_vm0, %v3496_v2  ;;  %3171 = vmatmul.msk.f32.gmra.mxu0 %vm44_vm0, %v3537_v11 }
  0x75   :  { %3151 = vmatmul.msk.f32.gmra.mxu2 %vm44_vm0, %v3496_v2  ;;  %3167 = vmatmul.msk.f32.gmra.mxu3 %vm44_vm0, %v3496_v2 }
  0x7c   :  { %3136 = vmatmul.msk.f32.gmra.mxu1 %vm44_vm0, %v3501_v3  ;;  %3172 = vmatmul.msk.f32.gmra.mxu0 %vm44_vm0, %v3553_v13 }
  0x7d   :  { %3152 = vmatmul.msk.f32.gmra.mxu2 %vm44_vm0, %v3501_v3  ;;  %3168 = vmatmul.msk.f32.gmra.mxu3 %vm44_vm0, %v3501_v3 }
  0x81   :  { %v3729_v28 = vpop.f32.mrf.mxu0  ;;  %v3731_v29 = vpop.f32.mrf.mxu1 }
  0x82   :  { %4897 = vst [vmem:[#allocation8_spill] sm:$0xff] %v3729_v28 }
  0x84   :  { %3137 = vmatmul.msk.f32.gmra.mxu1 %vm44_vm0, %v3506_v4  ;;  %3173 = vmatmul.msk.f32.gmra.mxu0 %vm44_vm0, %v3566_v14 }
  0x85   :  { %3153 = vmatmul.msk.f32.gmra.mxu2 %vm44_vm0, %v3506_v4  ;;  %3169 = vmatmul.msk.f32.gmra.mxu3 %vm44_vm0, %v3506_v4 }
  0x88   :  { %v3741_v30 = vpop.f32.mrf.mxu2  ;;  %v3743_v31 = vpop.f32.mrf.mxu3 }
  0x89   :  { %v3745_v32 = vpop.f32.mrf.mxu0  ;;  %v3747_v33 = vpop.f32.mrf.mxu1 }
  0x8a   :  { %4898 = vst [vmem:[#allocation9_spill] sm:$0xff] %v3745_v32 }
  0x8c   :  { %3174 = vmatmul.msk.f32.gmra.mxu0 %vm44_vm0, %v3579_v15  ;;  %3186 = vmatmul.msk.f32.vlgmr.msra.gmra.mxu1 %vm44_vm0, %v3491_v1 }
  0x8d   :  { %3202 = vmatmul.msk.f32.vlgmr.msra.gmra.mxu2 %vm44_vm0, %v3491_v1  ;;  %3218 = vmatmul.msk.f32.vlgmr.msra.gmra.mxu3 %vm44_vm0, %v3491_v1 }
  0x90   :  { %v3757_v34 = vpop.f32.mrf.mxu2  ;;  %v3759_v35 = vpop.f32.mrf.mxu3 }
  0x91   :  { %4899 = vst [vmem:[#allocation10_spill] sm:$0xff] %v3757_v34  ;;  %v3761_v36 = vpop.f32.mrf.mxu0  ;;  %v3763_v37 = vpop.f32.mrf.mxu1  ;;  %v1796_v34 = vld [vmem:[%s4875_s2 + $0x60] sm:$0xff] }
  0x92   :  { %4900 = vst [vmem:[#allocation11_spill] sm:$0xff] %v3759_v35  ;;  %1860 = vmatpush.msrb.mxu0 %v1796_v34  ;;  %v1942_v34 = vld [vmem:[%s4875_s2 + $0x68] sm:$0xff] }
  0x93   :  { %4901 = vst [vmem:[#allocation12_spill] sm:$0xff] %v3761_v36  ;;  %2006 = vmatpush.msra.mxu1 %v1942_v34 }
  0x94   :  { %3175 = vmatmul.msk.f32.gmra.mxu0 %vm44_vm0, %v3592_v16  ;;  %3187 = vmatmul.msk.f32.gmra.mxu1 %vm44_vm0, %v3537_v11 }
  0x95   :  { %3203 = vmatmul.msk.f32.gmra.mxu2 %vm44_vm0, %v3537_v11  ;;  %3219 = vmatmul.msk.f32.gmra.mxu3 %vm44_vm0, %v3537_v11 }
  0x98   :  { %v3773_v38 = vpop.f32.mrf.mxu2  ;;  %v3775_v39 = vpop.f32.mrf.mxu3 }
  0x99   :  { %4902 = vst [vmem:[#allocation13_spill] sm:$0xff] %v3773_v38  ;;  %v3777_v40 = vpop.f32.mrf.mxu0  ;;  %v3779_v41 = vpop.f32.mrf.mxu1  ;;  %v2234_v38 = vld [vmem:[%s4875_s2 + $0x78] sm:$0xff] }
  0x9a   :  { %4903 = vst [vmem:[#allocation14_spill] sm:$0xff] %v3775_v39  ;;  %2298 = vmatpush.msra.mxu3 %v2234_v38 }
  0x9c   :  { %3176 = vmatmul.msk.f32.gmra.mxu0 %vm44_vm0, %v3605_v17  ;;  %3188 = vmatmul.msk.f32.gmra.mxu1 %vm44_vm0, %v3553_v13 }
  0x9d   :  { %3204 = vmatmul.msk.f32.gmra.mxu2 %vm44_vm0, %v3553_v13  ;;  %3220 = vmatmul.msk.f32.gmra.mxu3 %vm44_vm0, %v3553_v13 }
  0xa0   :  { %v3789_v42 = vpop.f32.mrf.mxu2  ;;  %v3791_v43 = vpop.f32.mrf.mxu3 }
  0xa1   :  { %4904 = vst [vmem:[#allocation15_spill] sm:$0xff] %v3789_v42  ;;  %v3793_v44 = vpop.f32.mrf.mxu0  ;;  %v3795_v45 = vpop.f32.mrf.mxu1 }
  0xa2   :  { %4905 = vst [vmem:[#allocation16_spill] sm:$0xff] %v3791_v43 }
  0xa4   :  { %3177 = vmatmul.msk.f32.gmra.mxu0 %vm44_vm0, %v3618_v18  ;;  %3189 = vmatmul.msk.f32.gmra.mxu1 %vm44_vm0, %v3566_v14 }
  0xa5   :  { %3205 = vmatmul.msk.f32.gmra.mxu2 %vm44_vm0, %v3566_v14  ;;  %3221 = vmatmul.msk.f32.gmra.mxu3 %vm44_vm0, %v3566_v14 }
  0xa8   :  { %v3805_v46 = vpop.f32.mrf.mxu2  ;;  %v3807_v47 = vpop.f32.mrf.mxu3 }
  0xa9   :  { %4906 = vst [vmem:[#allocation17_spill] sm:$0xff] %v3805_v46  ;;  %v3809_v48 = vpop.f32.mrf.mxu0  ;;  %v3811_v49 = vpop.f32.mrf.mxu1 }
  0xaa   :  { %4907 = vst [vmem:[#allocation18_spill] sm:$0xff] %v3807_v47 }
  0xac   :  { %3178 = vmatmul.msk.f32.gmra.mxu0 %vm44_vm0, %v3631_v19  ;;  %3190 = vmatmul.msk.f32.gmra.mxu1 %vm44_vm0, %v3579_v15 }
  0xad   :  { %3206 = vmatmul.msk.f32.gmra.mxu2 %vm44_vm0, %v3579_v15  ;;  %3222 = vmatmul.msk.f32.gmra.mxu3 %vm44_vm0, %v3579_v15 }
  0xb0   :  { %v3821_v50 = vpop.f32.mrf.mxu2  ;;  %v3823_v51 = vpop.f32.mrf.mxu3 }
  0xb1   :  { %v3825_v52 = vpop.f32.mrf.mxu0  ;;  %v3827_v53 = vpop.f32.mrf.mxu1 }
  0xb4   :  { %3179 = vmatmul.msk.f32.gmra.mxu0 %vm44_vm0, %v3644_v20  ;;  %3191 = vmatmul.msk.f32.gmra.mxu1 %vm44_vm0, %v3592_v16 }
  0xb5   :  { %3207 = vmatmul.msk.f32.gmra.mxu2 %vm44_vm0, %v3592_v16  ;;  %3223 = vmatmul.msk.f32.gmra.mxu3 %vm44_vm0, %v3592_v16 }
  0xb8   :  { %v3837_v54 = vpop.f32.mrf.mxu2  ;;  %v3839_v55 = vpop.f32.mrf.mxu3 }
  0xb9   :  { %v3841_v56 = vpop.f32.mrf.mxu0  ;;  %v3843_v57 = vpop.f32.mrf.mxu1 }
  0xbc   :  { %3180 = vmatmul.msk.f32.gmra.mxu0 %vm44_vm0, %v3657_v21  ;;  %3192 = vmatmul.msk.f32.gmra.mxu1 %vm44_vm0, %v3605_v17 }
  0xbd   :  { %3208 = vmatmul.msk.f32.gmra.mxu2 %vm44_vm0, %v3605_v17  ;;  %3224 = vmatmul.msk.f32.gmra.mxu3 %vm44_vm0, %v3605_v17 }
  0xc0   :  { %v3853_v58 = vpop.f32.mrf.mxu2  ;;  %v3855_v59 = vpop.f32.mrf.mxu3 }
  0xc1   :  { %v3857_v60 = vpop.f32.mrf.mxu0  ;;  %v3859_v61 = vpop.f32.mrf.mxu1 }
  0xc4   :  { %3181 = vmatmul.msk.f32.gmra.mxu0 %vm44_vm0, %v3670_v22  ;;  %3193 = vmatmul.msk.f32.gmra.mxu1 %vm44_vm0, %v3618_v18 }
  0xc5   :  { %3209 = vmatmul.msk.f32.gmra.mxu2 %vm44_vm0, %v3618_v18  ;;  %3225 = vmatmul.msk.f32.gmra.mxu3 %vm44_vm0, %v3618_v18 }
  0xc8   :  { %v3869_v62 = vpop.f32.mrf.mxu2  ;;  %v3871_v63 = vpop.f32.mrf.mxu3 }
  0xc9   :  { %v3873_v0 = vpop.f32.mrf.mxu0  ;;  %v3875_v5 = vpop.f32.mrf.mxu1 }
  0xcc   :  { %3182 = vmatmul.msk.f32.gmra.mxu0 %vm44_vm0, %v3683_v23  ;;  %3194 = vmatmul.msk.f32.gmra.mxu1 %vm44_vm0, %v3631_v19 }
  0xcd   :  { %3210 = vmatmul.msk.f32.gmra.mxu2 %vm44_vm0, %v3631_v19  ;;  %3226 = vmatmul.msk.f32.gmra.mxu3 %vm44_vm0, %v3631_v19 }
  0xd0   :  { %v3885_v6 = vpop.f32.mrf.mxu2  ;;  %v3887_v7 = vpop.f32.mrf.mxu3 }
  0xd1   :  { %v3889_v8 = vpop.f32.mrf.mxu0  ;;  %v3891_v9 = vpop.f32.mrf.mxu1 }
  0xd4   :  { %3183 = vmatmul.msk.f32.gmra.mxu0 %vm44_vm0, %v3496_v2  ;;  %3195 = vmatmul.msk.f32.gmra.mxu1 %vm44_vm0, %v3644_v20 }
  0xd5   :  { %3211 = vmatmul.msk.f32.gmra.mxu2 %vm44_vm0, %v3644_v20  ;;  %3227 = vmatmul.msk.f32.gmra.mxu3 %vm44_vm0, %v3644_v20 }
  0xd8   :  { %v3901_v10 = vpop.f32.mrf.mxu2  ;;  %v3903_v12 = vpop.f32.mrf.mxu3 }
  0xd9   :  { %v3905_v24 = vpop.f32.mrf.mxu0  ;;  %v3907_v25 = vpop.f32.mrf.mxu1 }
  0xdc   :  { %3184 = vmatmul.msk.f32.gmra.mxu0 %vm44_vm0, %v3501_v3  ;;  %3196 = vmatmul.msk.f32.gmra.mxu1 %vm44_vm0, %v3657_v21 }
  0xdd   :  { %3212 = vmatmul.msk.f32.gmra.mxu2 %vm44_vm0, %v3657_v21  ;;  %3228 = vmatmul.msk.f32.gmra.mxu3 %vm44_vm0, %v3657_v21 }
  0xe0   :  { %v3917_v26 = vpop.f32.mrf.mxu2  ;;  %v3919_v27 = vpop.f32.mrf.mxu3 }
  0xe1   :  { %v3921_v20 = vpop.f32.mrf.mxu0  ;;  %v289_v35 = vpop.f32.mrf.mxu1 }
  0xe4   :  { %3185 = vmatmul.msk.f32.gmra.mxu0 %vm44_vm0, %v3506_v4  ;;  %3197 = vmatmul.msk.f32.gmra.mxu1 %vm44_vm0, %v3670_v22 }
  0xe5   :  { %3213 = vmatmul.msk.f32.gmra.mxu2 %vm44_vm0, %v3670_v22  ;;  %3229 = vmatmul.msk.f32.gmra.mxu3 %vm44_vm0, %v3670_v22  ;;  %v2088_v22 = vld [vmem:[%s4875_s2 + $0x70] sm:$0xff] }
  0xe6   :  { %2152 = vmatpush.msra.mxu2 %v2088_v22 }
  0xe8   :  { %v3934_v21 = vpop.f32.mrf.mxu2  ;;  %v3936_v28 = vpop.f32.mrf.mxu3 }
  0xe9   :  { %v292_v19 = vpop.f32.mrf.mxu1  ;;  %v3938_v39 = vpop.f32.mrf.mxu0 }
  0xea   :  { %4908 = vst [vmem:[#allocation19_spill] sm:$0xff] %v3938_v39 }
  0xec   :  { %3198 = vmatmul.msk.f32.gmra.mxu1 %vm44_vm0, %v3683_v23  ;;  %3234 = vmatmul.msk.f32.vlgmr.msra.gmra.mxu0 %vm44_vm0, %v3491_v1 }
  0xed   :  { %3214 = vmatmul.msk.f32.gmra.mxu2 %vm44_vm0, %v3683_v23  ;;  %3230 = vmatmul.msk.f32.gmra.mxu3 %vm44_vm0, %v3683_v23 }
  0xf0   :  { %v438_v39 = vpop.f32.mrf.mxu2  ;;  %v584_v32 = vpop.f32.mrf.mxu3 }
  0xf1   :  { %v295_v43 = vpop.f32.mrf.mxu1  ;;  %v3957_v42 = vpop.f32.mrf.mxu0 }
  0xf2   :  { %4909 = vst [vmem:[#allocation20_spill] sm:$0xff] %v3957_v42 }
  0xf4   :  { %3199 = vmatmul.msk.f32.gmra.mxu1 %vm44_vm0, %v3496_v2  ;;  %3235 = vmatmul.msk.f32.gmra.mxu0 %vm44_vm0, %v3537_v11 }
  0xf5   :  { %3215 = vmatmul.msk.f32.gmra.mxu2 %vm44_vm0, %v3496_v2  ;;  %3231 = vmatmul.msk.f32.gmra.mxu3 %vm44_vm0, %v3496_v2 }
  0xf8   :  { %v441_v34 = vpop.f32.mrf.mxu2  ;;  %v587_v22 = vpop.f32.mrf.mxu3 }
  0xf9   :  { %v298_v38 = vpop.f32.mrf.mxu1  ;;  %v3967_v23 = vpop.f32.mrf.mxu0 }
  0xfa   :  { %4910 = vst [vmem:[#allocation21_spill] sm:$0xff] %v3967_v23 }
  0xfc   :  { %3200 = vmatmul.msk.f32.gmra.mxu1 %vm44_vm0, %v3501_v3  ;;  %3236 = vmatmul.msk.f32.gmra.mxu0 %vm44_vm0, %v3553_v13 }
  0xfd   :  { %3216 = vmatmul.msk.f32.gmra.mxu2 %vm44_vm0, %v3501_v3  ;;  %3232 = vmatmul.msk.f32.gmra.mxu3 %vm44_vm0, %v3501_v3 }
 0x100   :  { %v444_v42 = vpop.f32.mrf.mxu2  ;;  %v590_v36 = vpop.f32.mrf.mxu3 }
 0x101   :  { %v301_v2 = vpop.f32.mrf.mxu1  ;;  %v3977_v47 = vpop.f32.mrf.mxu0 }
 0x102   :  { %4911 = vst [vmem:[#allocation22_spill] sm:$0xff] %v3977_v47  ;;  %2411 = vmatpush.msra.mxu0 %v301_v2  ;;  %v3434_v2 = vmov 1  }
 0x104   :  { %3201 = vmatmul.msk.f32.gmra.mxu1 %vm44_vm0, %v3506_v4  ;;  %3237 = vmatmul.msk.f32.gmra.mxu0 %vm44_vm0, %v3566_v14 }
 0x105   :  { %3217 = vmatmul.msk.f32.gmra.mxu2 %vm44_vm0, %v3506_v4  ;;  %3233 = vmatmul.msk.f32.gmra.mxu3 %vm44_vm0, %v3506_v4 }
 0x106   :  { %2412 = vmatpush.msra.mxu0 %v298_v38  ;;  %v4212_v38 = vld [vmem:[%s4876_s1 + $0x70] sm:$0xff] }
 0x108   :  { %2413 = vmatpush.msra.mxu0 %v295_v43  ;;  %v447_v3 = vpop.f32.mrf.mxu2  ;;  %v593_v23 = vpop.f32.mrf.mxu3 }
 0x109   :  { %v3987_v46 = vpop.f32.mrf.mxu0  ;;  %v3989_v47 = vpop.f32.mrf.mxu1 }
 0x10a   :  { %2414 = vmatpush.msra.mxu0 %v292_v19 }
 0x10c   :  { %2415 = vmatpush.msra.mxu0 %v289_v35  ;;  %3250 = vmatmul.msk.f32.vlgmr.msrb.gmra.mxu1 %vm44_vm0, %v3491_v1 }
 0x10d   :  { %3238 = vmatmul.msk.f32.gmra.mxu0 %vm44_vm0, %v3579_v15  ;;  %3266 = vmatmul.msk.f32.vlgmr.msrb.gmra.mxu2 %vm44_vm0, %v3491_v1 }
 0x10e   :  { %3282 = vmatmul.msk.f32.vlgmr.msrb.gmra.mxu3 %vm44_vm0, %v3491_v1  ;;  %2416 = vmatpush.msra.mxu0 %v3907_v25  ;;  %v4192_v25 = vld [vmem:[%s4876_s1 + $0x68] sm:$0xff] }
 0x10f   :  { %2431 = vmatpush.msrb.mxu1 %v3743_v31  ;;  %2473 = vmatpush.msrb.mxu2 %v447_v3 }
 0x110   :  { %2516 = vmatpush.msrb.mxu3 %v593_v23  ;;  %2417 = vmatpush.msra.mxu0 %v3891_v9  ;;  %v4002_v4 = vpop.f32.mrf.mxu2  ;;  %v4004_v19 = vpop.f32.mrf.mxu3  ;;  %v4927_v9 = vld [vmem:[#allocation7_spill] sm:$0xff] }
 0x111   :  { %2432 = vmatpush.msrb.mxu1 %v3741_v30  ;;  %2474 = vmatpush.msrb.mxu2 %v444_v42  ;;  %v4007_v35 = vpop.f32.mrf.mxu0  ;;  %v4009_v43 = vpop.f32.mrf.mxu1  ;;  %v4916_v42 = vld [vmem:[#allocation16_spill] sm:$0xff] }
 0x112   :  { %2517 = vmatpush.msrb.mxu3 %v590_v36  ;;  %2418 = vmatpush.msra.mxu0 %v3875_v5  ;;  %v4912_v36 = vld [vmem:[#allocation17_spill] sm:$0xff]  ;;  %v4926_v5 = vld [vmem:[#allocation6_spill] sm:$0xff] }
 0x113   :  { %2433 = vmatpush.msrb.mxu1 %v3731_v29  ;;  %2475 = vmatpush.msrb.mxu2 %v441_v34 }
 0x114   :  { %2518 = vmatpush.msrb.mxu3 %v587_v22  ;;  %2419 = vmatpush.msra.mxu0 %v3859_v61  ;;  %v4925_v61 = vld [vmem:[#allocation5_spill] sm:$0xff] }
 0x115   :  { %2434 = vmatpush.msrb.mxu1 %v3921_v20  ;;  %2476 = vmatpush.msrb.mxu2 %v438_v39  ;;  %v4914_v39 = vld [vmem:[#allocation12_spill] sm:$0xff] }
 0x116   :  { %2519 = vmatpush.msrb.mxu3 %v584_v32  ;;  %3239 = vmatmul.msk.f32.gmra.mxu0 %vm44_vm0, %v3592_v16 }
 0x117   :  { %3251 = vmatmul.msk.f32.gmra.mxu1 %vm44_vm0, %v3537_v11  ;;  %3267 = vmatmul.msk.f32.gmra.mxu2 %vm44_vm0, %v3537_v11 }
 0x118   :  { %3283 = vmatmul.msk.f32.gmra.mxu3 %vm44_vm0, %v3537_v11  ;;  %2420 = vmatpush.msra.mxu0 %v3843_v57  ;;  %v4024_v1 = vpop.f32.mrf.mxu2  ;;  %v4026_v23 = vpop.f32.mrf.mxu3  ;;  %v4924_v57 = vld [vmem:[#allocation4_spill] sm:$0xff] }
 0x119   :  { %2435 = vmatpush.msrb.mxu1 %v3905_v24  ;;  %2477 = vmatpush.msrb.mxu2 %v3934_v21  ;;  %v4030_v20 = vpop.f32.mrf.mxu0  ;;  %v4032_v29 = vpop.f32.mrf.mxu1  ;;  %v4187_v24 = vld [vmem:[%s4877_s0] sm:$0xff] }
 0x11a   :  { %2520 = vmatpush.msrb.mxu3 %v3936_v28  ;;  %2421 = vmatpush.msra.mxu0 %v3827_v53  ;;  %v4922_v53 = vld [vmem:[#allocation10_spill] sm:$0xff] }
 0x11b   :  { %2436 = vmatpush.msrb.mxu1 %v3889_v8  ;;  %2478 = vmatpush.msrb.mxu2 %v3917_v26 }
 0x11c   :  { %2521 = vmatpush.msrb.mxu3 %v3919_v27  ;;  %2422 = vmatpush.msra.mxu0 %v3811_v49 }
 0x11d   :  { %2437 = vmatpush.msrb.mxu1 %v3873_v0  ;;  %2479 = vmatpush.msrb.mxu2 %v3901_v10 }
 0x11e   :  { %2522 = vmatpush.msrb.mxu3 %v3903_v12  ;;  %2423 = vmatpush.msra.mxu0 %v3795_v45  ;;  %v4918_v45 = vld [vmem:[#allocation13_spill] sm:$0xff] }
 0x11f   :  { %2438 = vmatpush.msrb.mxu1 %v3857_v60  ;;  %2480 = vmatpush.msrb.mxu2 %v3885_v6 }
 0x120   :  { %2523 = vmatpush.msrb.mxu3 %v3887_v7  ;;  %3240 = vmatmul.msk.f32.gmra.mxu0 %vm44_vm0, %v3605_v17  ;;  %v4049_v11 = vpop.f32.mrf.mxu2  ;;  %v4051_v21 = vpop.f32.mrf.mxu3 }
 0x121   :  { %3252 = vmatmul.msk.f32.gmra.mxu1 %vm44_vm0, %v3553_v13  ;;  %3268 = vmatmul.msk.f32.gmra.mxu2 %vm44_vm0, %v3553_v13  ;;  %v4057_v28 = vpop.f32.mrf.mxu0  ;;  %v4059_v30 = vpop.f32.mrf.mxu1 }
 0x122   :  { %3284 = vmatmul.msk.f32.gmra.mxu3 %vm44_vm0, %v3553_v13  ;;  %2424 = vmatpush.msra.mxu0 %v3779_v41  ;;  %v4915_v41 = vld [vmem:[#allocation15_spill] sm:$0xff] }
 0x123   :  { %2439 = vmatpush.msrb.mxu1 %v3841_v56  ;;  %2481 = vmatpush.msrb.mxu2 %v3869_v62 }
 0x124   :  { %2524 = vmatpush.msrb.mxu3 %v3871_v63  ;;  %2425 = vmatpush.msra.mxu0 %v3763_v37  ;;  %v4913_v37 = vld [vmem:[#allocation18_spill] sm:$0xff] }
 0x125   :  { %2440 = vmatpush.msrb.mxu1 %v3825_v52  ;;  %2482 = vmatpush.msrb.mxu2 %v3853_v58  ;;  %v4921_v52 = vld [vmem:[#allocation8_spill] sm:$0xff] }
 0x126   :  { %2525 = vmatpush.msrb.mxu3 %v3855_v59  ;;  %2426 = vmatpush.msra.mxu0 %v3747_v33 }
 0x127   :  { %2441 = vmatpush.msrb.mxu1 %v3809_v48  ;;  %2483 = vmatpush.msrb.mxu2 %v3837_v54  ;;  %v4923_v54 = vld [vmem:[#allocation11_spill] sm:$0xff] }
 0x128   :  { %2526 = vmatpush.msrb.mxu3 %v3839_v55  ;;  %3241 = vmatmul.msk.f32.gmra.mxu0 %vm44_vm0, %v3618_v18  ;;  %v4077_v13 = vpop.f32.mrf.mxu2  ;;  %v4079_v31 = vpop.f32.mrf.mxu3 }
 0x129   :  { %2442 = vmatpush.msrb.mxu1 %v3793_v44  ;;  %2484 = vmatpush.msrb.mxu2 %v3821_v50  ;;  %v4083_v32 = vpop.f32.mrf.mxu0  ;;  %v4085_v33 = vpop.f32.mrf.mxu1  ;;  %v4917_v44 = vld [vmem:[#allocation9_spill] sm:$0xff] }
 0x12a   :  { %2527 = vmatpush.msrb.mxu3 %v3823_v51  ;;  %3253 = vmatmul.msk.f32.gmra.mxu1 %vm44_vm0, %v3566_v14 }
 0x12b   :  { %3269 = vmatmul.msk.f32.gmra.mxu2 %vm44_vm0, %v3566_v14  ;;  %3285 = vmatmul.msk.f32.gmra.mxu3 %vm44_vm0, %v3566_v14  ;;  %v4919_v14 = vld [vmem:[#allocation14_spill] sm:$0xff] }
 0x12c   :  { %2443 = vmatpush.msrb.mxu1 %v3777_v40  ;;  %2485 = vmatpush.msrb.mxu2 %v4912_v36  ;;  %v4920_v40 = vld [vmem:[#allocation3_spill] sm:$0xff] }
 0x12d   :  { %2528 = vmatpush.msrb.mxu3 %v4913_v37 }
 0x12e   :  { %2444 = vmatpush.msrb.mxu1 %v4914_v39  ;;  %2486 = vmatpush.msrb.mxu2 %v4915_v41  ;;  %v4232_v41 = vld [vmem:[%s4876_s1 + $0x78] sm:$0xff] }
 0x12f   :  { %2529 = vmatpush.msrb.mxu3 %v4916_v42 }
 0x130   :  { %2445 = vmatpush.msrb.mxu1 %v4917_v44  ;;  %2487 = vmatpush.msrb.mxu2 %v4918_v45  ;;  %v4102_v48 = vpop.f32.mrf.mxu2  ;;  %v4104_v49 = vpop.f32.mrf.mxu3 }
 0x131   :  { %2530 = vmatpush.msrb.mxu3 %v4919_v14  ;;  %3242 = vmatmul.msk.f32.gmra.mxu0 %vm44_vm0, %v4920_v40  ;;  %v4109_v50 = vpop.f32.mrf.mxu0  ;;  %v4111_v51 = vpop.f32.mrf.mxu1 }
 0x132   :  { %2446 = vmatpush.msrb.mxu1 %v4921_v52  ;;  %2488 = vmatpush.msrb.mxu2 %v4922_v53 }
 0x133   :  { %2531 = vmatpush.msrb.mxu3 %v4923_v54  ;;  %3254 = vmatmul.msk.f32.gmra.mxu1 %vm44_vm0, %v3579_v15 }
 0x134   :  { %3270 = vmatmul.msk.f32.gmra.mxu2 %vm44_vm0, %v3579_v15  ;;  %3286 = vmatmul.msk.f32.gmra.mxu3 %vm44_vm0, %v3579_v15 }
 0x138   :  { %v4122_v55 = vpop.f32.mrf.mxu2  ;;  %v4124_v56 = vpop.f32.mrf.mxu3 }
 0x139   :  { %3243 = vmatmul.msk.f32.gmra.mxu0 %vm44_vm0, %v4924_v57  ;;  %v4128_v58 = vpop.f32.mrf.mxu0  ;;  %v4130_v59 = vpop.f32.mrf.mxu1 }
 0x13b   :  { %3255 = vmatmul.msk.f32.gmra.mxu1 %vm44_vm0, %v3592_v16 }
 0x13c   :  { %3271 = vmatmul.msk.f32.gmra.mxu2 %vm44_vm0, %v3592_v16  ;;  %3287 = vmatmul.msk.f32.gmra.mxu3 %vm44_vm0, %v3592_v16 }
 0x140   :  { %v4138_v15 = vpop.f32.mrf.mxu2  ;;  %v4140_v60 = vpop.f32.mrf.mxu3 }
 0x141   :  { %3244 = vmatmul.msk.f32.gmra.mxu0 %vm44_vm0, %v4925_v61  ;;  %v4144_v62 = vpop.f32.mrf.mxu0  ;;  %v4146_v63 = vpop.f32.mrf.mxu1 }
 0x143   :  { %3256 = vmatmul.msk.f32.gmra.mxu1 %vm44_vm0, %v3605_v17 }
 0x144   :  { %3272 = vmatmul.msk.f32.gmra.mxu2 %vm44_vm0, %v3605_v17  ;;  %3288 = vmatmul.msk.f32.gmra.mxu3 %vm44_vm0, %v3605_v17 }
 0x148   :  { %v4154_v16 = vpop.f32.mrf.mxu2  ;;  %v4156_v0 = vpop.f32.mrf.mxu3 }
 0x149   :  { %3245 = vmatmul.msk.f32.gmra.mxu0 %vm44_vm0, %v4926_v5  ;;  %v4160_v6 = vpop.f32.mrf.mxu0  ;;  %v4162_v7 = vpop.f32.mrf.mxu1 }
 0x14b   :  { %3257 = vmatmul.msk.f32.gmra.mxu1 %vm44_vm0, %v3618_v18 }
 0x14c   :  { %3273 = vmatmul.msk.f32.gmra.mxu2 %vm44_vm0, %v3618_v18  ;;  %3289 = vmatmul.msk.f32.gmra.mxu3 %vm44_vm0, %v3618_v18  ;;  %v3433_v18 = vmov 2  }
 0x14d   :  { %3414 = vset.pattern.permute.xlu0 %v3433_v18 }
 0x14e   :  { %2452 = vperm.xlu0 %3414, %v4187_v24  }
 0x150   :  { %v4170_v17 = vpop.f32.mrf.mxu2  ;;  %v4172_v8 = vpop.f32.mrf.mxu3 }
 0x151   :  { %3246 = vmatmul.msk.f32.gmra.mxu0 %vm44_vm0, %v4927_v9  ;;  %v733_v10 = vpop.f32.mrf.mxu0  ;;  %v4176_v12 = vpop.f32.mrf.mxu1 }
 0x153   :  { %3258 = vmatmul.msk.f32.gmra.mxu1 %vm44_vm0, %v4920_v40 }
 0x154   :  { %3274 = vmatmul.msk.f32.gmra.mxu2 %vm44_vm0, %v4920_v40  ;;  %3290 = vmatmul.msk.f32.gmra.mxu3 %vm44_vm0, %v4920_v40  ;;  %v4253_v40 = vld [vmem:[%s4876_s1] sm:$0xff] }
 0x156   :  { %3415 = vset.pattern.permute.xlu0 %v3434_v2 }
 0x157   :  { %2390 = vperm.xlu0 %3415, %v4187_v24  }
 0x158   :  { %v4195_v26 = vpop.f32.mrf.mxu2  ;;  %v4197_v27 = vpop.f32.mrf.mxu3 }
 0x159   :  { %3247 = vmatmul.msk.f32.gmra.mxu0 %vm44_vm0, %v4192_v25  ;;  %v736_v34 = vpop.f32.mrf.mxu0  ;;  %v4201_v22 = vpop.f32.mrf.mxu1 }
 0x15b   :  { %3259 = vmatmul.msk.f32.gmra.mxu1 %vm44_vm0, %v4924_v57 }
 0x15c   :  { %3275 = vmatmul.msk.f32.gmra.mxu2 %vm44_vm0, %v4924_v57  ;;  %3291 = vmatmul.msk.f32.gmra.mxu3 %vm44_vm0, %v4924_v57 }
 0x160   :  { %v4215_v3 = vpop.f32.mrf.mxu2  ;;  %v4217_v36 = vpop.f32.mrf.mxu3 }
 0x161   :  { %3248 = vmatmul.msk.f32.gmra.mxu0 %vm44_vm0, %v4212_v38  ;;  %v739_v37 = vpop.f32.mrf.mxu0  ;;  %v4221_v39 = vpop.f32.mrf.mxu1 }
 0x163   :  { %3260 = vmatmul.msk.f32.gmra.mxu1 %vm44_vm0, %v4925_v61 }
 0x164   :  { %3276 = vmatmul.msk.f32.gmra.mxu2 %vm44_vm0, %v4925_v61  ;;  %3292 = vmatmul.msk.f32.gmra.mxu3 %vm44_vm0, %v4925_v61  ;;  %v4274_v61 = vld [vmem:[%s4876_s1 + $0x8] sm:$0xff] }
 0x168   :  { %v4234_v42 = vpop.f32.mrf.mxu2  ;;  %v4236_v44 = vpop.f32.mrf.mxu3 }
 0x169   :  { %3249 = vmatmul.msk.f32.gmra.mxu0 %vm44_vm0, %v4232_v41  ;;  %v4240_v45 = vpop.f32.mrf.mxu1  ;;  %v4242_v14 = vpop.f32.mrf.mxu0 }
 0x16a   :  { %4928 = vst [vmem:[#allocation17_spill] sm:$0xff] %v4242_v14 }
 0x16b   :  { %3261 = vmatmul.msk.f32.gmra.mxu1 %vm44_vm0, %v4926_v5 }
 0x16c   :  { %3277 = vmatmul.msk.f32.gmra.mxu2 %vm44_vm0, %v4926_v5  ;;  %3293 = vmatmul.msk.f32.gmra.mxu3 %vm44_vm0, %v4926_v5  ;;  %v3435_v5 = vmov 3  }
 0x16d   :  { %3416 = vset.pattern.permute.xlu1 %v3435_v5  ;;  %v3436_v5 = vmov 0  }
 0x16e   :  { %2495 = vperm.xlu1 %3416, %v4187_v24  }
 0x170   :  { %v4255_v52 = vpop.f32.mrf.mxu2  ;;  %v4257_v53 = vpop.f32.mrf.mxu3 }
 0x171   :  { %3298 = vmatmul.msk.f32.vlgmr.msrb.gmra.mxu0 %vm44_vm0, %v4253_v40  ;;  %v4261_v54 = vpop.f32.mrf.mxu1  ;;  %v4263_v57 = vpop.f32.mrf.mxu0 }
 0x172   :  { %4929 = vst [vmem:[#allocation18_spill] sm:$0xff] %v4263_v57  ;;  %2559 = vmatpush.msrb.mxu0 %v739_v37  ;;  %v4335_v57 = vld [vmem:[%s4876_s1 + $0x20] sm:$0xff] }
 0x173   :  { %3262 = vmatmul.msk.f32.gmra.mxu1 %vm44_vm0, %v4927_v9 }
 0x174   :  { %3278 = vmatmul.msk.f32.gmra.mxu2 %vm44_vm0, %v4927_v9  ;;  %3294 = vmatmul.msk.f32.gmra.mxu3 %vm44_vm0, %v4927_v9 }
 0x175   :  { %2560 = vmatpush.msrb.mxu0 %v736_v34 }
 0x176   :  { %3417 = vset.pattern.permute.xlu1 %v3436_v5 }
 0x177   :  { %2561 = vmatpush.msrb.mxu0 %v733_v10  ;;  %2368 = vperm.xlu1 %3417, %v4187_v24  }
 0x178   :  { %v1025_v18 = vpop.f32.mrf.mxu2  ;;  %v1171_v2 = vpop.f32.mrf.mxu3 }
 0x179   :  { %2562 = vmatpush.msrb.mxu0 %v4160_v6  ;;  %v882_v37 = vpop.f32.mrf.mxu1  ;;  %v4278_v14 = vpop.f32.mrf.mxu0  ;;  %v4294_v6 = vld [vmem:[%s4876_s1 + $0x10] sm:$0xff] }
 0x17a   :  { %4930 = vst [vmem:[#allocation12_spill] sm:$0xff] %v4278_v14  ;;  %3299 = vmatmul.msk.f32.gmra.mxu0 %vm44_vm0, %v4274_v61  ;;  %v4935_v14 = vld [vmem:[#allocation19_spill] sm:$0xff] }
 0x17b   :  { %3263 = vmatmul.msk.f32.gmra.mxu1 %vm44_vm0, %v4192_v25  ;;  %2563 = vmatpush.msrb.mxu0 %v4144_v62 }
 0x17c   :  { %3279 = vmatmul.msk.f32.gmra.mxu2 %vm44_vm0, %v4192_v25  ;;  %3295 = vmatmul.msk.f32.gmra.mxu3 %vm44_vm0, %v4192_v25 }
 0x17d   :  { %2564 = vmatpush.msrb.mxu0 %v4128_v58 }
 0x17f   :  { %2565 = vmatpush.msrb.mxu0 %v4109_v50 }
 0x180   :  { %v1028_v9 = vpop.f32.mrf.mxu2  ;;  %v1174_v10 = vpop.f32.mrf.mxu3 }
 0x181   :  { %2566 = vmatpush.msrb.mxu0 %v4083_v32  ;;  %v885_v62 = vpop.f32.mrf.mxu1  ;;  %v4297_v34 = vpop.f32.mrf.mxu0  ;;  %v4314_v32 = vld [vmem:[%s4876_s1 + $0x18] sm:$0xff] }
 0x182   :  { %3300 = vmatmul.msk.f32.gmra.mxu0 %vm44_vm0, %v4294_v6 }
 0x183   :  { %3264 = vmatmul.msk.f32.gmra.mxu1 %vm44_vm0, %v4212_v38  ;;  %2567 = vmatpush.msrb.mxu0 %v4057_v28 }
 0x184   :  { %3280 = vmatmul.msk.f32.gmra.mxu2 %vm44_vm0, %v4212_v38  ;;  %3296 = vmatmul.msk.f32.gmra.mxu3 %vm44_vm0, %v4212_v38 }
 0x185   :  { %2568 = vmatpush.msrb.mxu0 %v4030_v20  ;;  %v4933_v20 = vld [vmem:[#allocation21_spill] sm:$0xff] }
 0x187   :  { %2569 = vmatpush.msrb.mxu0 %v4007_v35  ;;  %v4932_v35 = vld [vmem:[#allocation22_spill] sm:$0xff] }
 0x188   :  { %v1031_v50 = vpop.f32.mrf.mxu2  ;;  %v1177_v58 = vpop.f32.mrf.mxu3 }
 0x189   :  { %2570 = vmatpush.msrb.mxu0 %v3987_v46  ;;  %v4321_v5 = vpop.f32.mrf.mxu1  ;;  %v4934_v46 = vld [vmem:[#allocation20_spill] sm:$0xff] }
 0x18a   :  { %3301 = vmatmul.msk.f32.gmra.mxu0 %vm44_vm0, %v4314_v32  ;;  %v4319_v28 = vpop.f32.mrf.mxu0  ;;  %4931 = vst [vmem:[#allocation15_spill] sm:$0xff] %v4321_v5 }
 0x18b   :  { %3265 = vmatmul.msk.f32.gmra.mxu1 %vm44_vm0, %v4232_v41  ;;  %2571 = vmatpush.msrb.mxu0 %v4932_v35 }
 0x18c   :  { %3281 = vmatmul.msk.f32.gmra.mxu2 %vm44_vm0, %v4232_v41  ;;  %3297 = vmatmul.msk.f32.gmra.mxu3 %vm44_vm0, %v4232_v41 }
 0x18d   :  { %2572 = vmatpush.msrb.mxu0 %v4933_v20 }
 0x18f   :  { %2573 = vmatpush.msrb.mxu0 %v4934_v46 }
 0x190   :  { %v4337_v5 = vpop.f32.mrf.mxu2 }
 0x191   :  { %2574 = vmatpush.msrb.mxu0 %v4935_v14  ;;  %v4340_v35 = vpop.f32.mrf.mxu3  ;;  %v4357_v14 = vld [vmem:[%s4876_s1 + $0x28] sm:$0xff] }
 0x192   :  { %3302 = vmatmul.msk.f32.gmra.mxu0 %vm44_vm0, %v4335_v57 }
 0x193   :  { %3314 = vmatmul.msk.f32.vlgmr.msra.gmra.mxu1 %vm44_vm0, %v4253_v40  ;;  %v4346_v20 = vpop.f32.mrf.mxu0 }
 0x194   :  { %3330 = vmatmul.msk.f32.vlgmr.msra.gmra.mxu2 %vm44_vm0, %v4253_v40  ;;  %3346 = vmatmul.msk.f32.vlgmr.msra.gmra.mxu3 %vm44_vm0, %v4253_v40  ;;  %v4352_v46 = vpop.f32.mrf.mxu1 }
 0x195   :  { %2602 = vmatpush.msra.mxu1 %v885_v62  ;;  %2645 = vmatpush.msra.mxu2 %v1031_v50  ;;  %v3440_v50 = vmov 10  }
 0x196   :  { %2688 = vmatpush.msra.mxu3 %v1177_v58  ;;  %3422 = vset.pattern.permute.xlu0 %v3440_v50  ;;  %v2365_v58 = vlaneseq }
 0x197   :  { %2603 = vmatpush.msra.mxu1 %v882_v37  ;;  %2646 = vmatpush.msra.mxu2 %v1028_v9 }
 0x198   :  { %2689 = vmatpush.msra.mxu3 %v1174_v10  ;;  %2796 = vperm.xlu0 %3422, %v4187_v24  }
 0x199   :  { %2604 = vmatpush.msra.mxu1 %v4261_v54  ;;  %2647 = vmatpush.msra.mxu2 %v1025_v18  ;;  %v3438_v18 = vmov 8  }
 0x19a   :  { %2690 = vmatpush.msra.mxu3 %v1171_v2  ;;  %3303 = vmatmul.msk.f32.gmra.mxu0 %vm44_vm0, %v4357_v14  ;;  %v4362_v40 = vpop.f32.mrf.mxu2 }
 0x19b   :  { %2605 = vmatpush.msra.mxu1 %v4240_v45  ;;  %2648 = vmatpush.msra.mxu2 %v4255_v52  ;;  %v4366_v37 = vpop.f32.mrf.mxu3  ;;  %v4387_v52 = vld [vmem:[%s4876_s1 + $0x30] sm:$0xff] }
 0x19c   :  { %2691 = vmatpush.msra.mxu3 %v4257_v53  ;;  %3315 = vmatmul.msk.f32.gmra.mxu1 %vm44_vm0, %v4274_v61 }
 0x19d   :  { %3331 = vmatmul.msk.f32.gmra.mxu2 %vm44_vm0, %v4274_v61  ;;  %3347 = vmatmul.msk.f32.gmra.mxu3 %vm44_vm0, %v4274_v61  ;;  %v4375_v54 = vpop.f32.mrf.mxu0 }
 0x19e   :  { %2606 = vmatpush.msra.mxu1 %v4221_v39  ;;  %2649 = vmatpush.msra.mxu2 %v4234_v42  ;;  %v4379_v45 = vpop.f32.mrf.mxu1  ;;  %v3437_v42 = vmov 7  }
 0x19f   :  { %2692 = vmatpush.msra.mxu3 %v4236_v44  ;;  %3420 = vset.pattern.permute.xlu1 %v3437_v42 }
 0x1a0   :  { %2607 = vmatpush.msra.mxu1 %v4201_v22  ;;  %2650 = vmatpush.msra.mxu2 %v4215_v3 }
 0x1a1   :  { %2693 = vmatpush.msra.mxu3 %v4217_v36  ;;  %2667 = vperm.xlu1 %3420, %v4187_v24  }
 0x1a2   :  { %2608 = vmatpush.msra.mxu1 %v4176_v12  ;;  %2651 = vmatpush.msra.mxu2 %v4195_v26 }
 0x1a3   :  { %2694 = vmatpush.msra.mxu3 %v4197_v27  ;;  %3304 = vmatmul.msk.f32.gmra.mxu0 %vm44_vm0, %v4387_v52 }
 0x1a4   :  { %2609 = vmatpush.msra.mxu1 %v4162_v7  ;;  %2652 = vmatpush.msra.mxu2 %v4170_v17  ;;  %v4397_v22 = vpop.f32.mrf.mxu2  ;;  %v1787_v17 = vld [vmem:[%s4876_s1 + $0x38] sm:$0xff] }
 0x1a5   :  { %2695 = vmatpush.msra.mxu3 %v4172_v8  ;;  %3316 = vmatmul.msk.f32.gmra.mxu1 %vm44_vm0, %v4294_v6  ;;  %v4402_v3 = vpop.f32.mrf.mxu3  ;;  %v4404_v12 = vpop.f32.mrf.mxu0  ;;  %v4526_v8 = vld [vmem:[%s4876_s1 + $0x60] sm:$0xff] }
 0x1a6   :  { %3332 = vmatmul.msk.f32.gmra.mxu2 %vm44_vm0, %v4294_v6  ;;  %3348 = vmatmul.msk.f32.gmra.mxu3 %vm44_vm0, %v4294_v6  ;;  %v3439_v6 = vmov 6  }
 0x1a7   :  { %2610 = vmatpush.msra.mxu1 %v4146_v63  ;;  %2653 = vmatpush.msra.mxu2 %v4154_v16  ;;  %v4412_v7 = vpop.f32.mrf.mxu1 }
 0x1a8   :  { %2696 = vmatpush.msra.mxu3 %v4156_v0  ;;  %3418 = vset.pattern.permute.xlu2 %v3439_v6  ;;  %v3443_v6 = vmov 1.0  }
 0x1a9   :  { %2611 = vmatpush.msra.mxu1 %v4130_v59  ;;  %2654 = vmatpush.msra.mxu2 %v4138_v15 }
 0x1aa   :  { %2697 = vmatpush.msra.mxu3 %v4140_v60  ;;  %3423 = vset.pattern.permute.xlu1 %v3438_v18  ;;  %v3442_v18 = vmov 4  }
 0x1ab   :  { %2612 = vmatpush.msra.mxu1 %v4111_v51  ;;  %2655 = vmatpush.msra.mxu2 %v4122_v55 }
 0x1ac   :  { %2698 = vmatpush.msra.mxu3 %v4124_v56  ;;  %3305 = vmatmul.msk.f32.gmra.mxu0 %vm44_vm0, %v1787_v17  ;;  %v1791_v56 = vld [vmem:[%s4876_s1 + $0x58] sm:$0xff] }
 0x1ad   :  { %2613 = vmatpush.msra.mxu1 %v4085_v33  ;;  %2656 = vmatpush.msra.mxu2 %v4102_v48  ;;  %v1788_v48 = vld [vmem:[%s4876_s1 + $0x40] sm:$0xff] }
 0x1ae   :  { %2699 = vmatpush.msra.mxu3 %v4104_v49  ;;  %3317 = vmatmul.msk.f32.gmra.mxu1 %vm44_vm0, %v4314_v32  ;;  %v4430_v59 = vpop.f32.mrf.mxu2  ;;  %v4432_v15 = vpop.f32.mrf.mxu3 }
 0x1af   :  { %3333 = vmatmul.msk.f32.gmra.mxu2 %vm44_vm0, %v4314_v32  ;;  %3349 = vmatmul.msk.f32.gmra.mxu3 %vm44_vm0, %v4314_v32  ;;  %v4438_v51 = vpop.f32.mrf.mxu0 }
 0x1b0   :  { %2614 = vmatpush.msra.mxu1 %v4059_v30  ;;  %2657 = vmatpush.msra.mxu2 %v4077_v13  ;;  %v4442_v33 = vpop.f32.mrf.mxu1  ;;  %v1790_v30 = vld [vmem:[%s4876_s1 + $0x50] sm:$0xff] }
 0x1b1   :  { %2700 = vmatpush.msra.mxu3 %v4079_v31  ;;  %2710 = vperm.xlu1 %3423, %v4187_v24  }
 0x1b2   :  { %2615 = vmatpush.msra.mxu1 %v4032_v29  ;;  %2658 = vmatpush.msra.mxu2 %v4049_v11 }
 0x1b3   :  { %2701 = vmatpush.msra.mxu3 %v4051_v21  ;;  %2624 = vperm.xlu2 %3418, %v4187_v24  }
 0x1b4   :  { %2616 = vmatpush.msra.mxu1 %v4009_v43  ;;  %2659 = vmatpush.msra.mxu2 %v4024_v1 }
 0x1b5   :  { %2702 = vmatpush.msra.mxu3 %v4026_v23  ;;  %3306 = vmatmul.msk.f32.gmra.mxu0 %vm44_vm0, %v1788_v48 }
 0x1b6   :  { %2617 = vmatpush.msra.mxu1 %v3989_v47  ;;  %2660 = vmatpush.msra.mxu2 %v4002_v4  ;;  %v1789_v4 = vld [vmem:[%s4876_s1 + $0x48] sm:$0xff] }
 0x1b7   :  { %2703 = vmatpush.msra.mxu3 %v4004_v19  ;;  %3318 = vmatmul.msk.f32.gmra.mxu1 %vm44_vm0, %v4335_v57  ;;  %v4460_v29 = vpop.f32.mrf.mxu2  ;;  %v4462_v11 = vpop.f32.mrf.mxu3 }
 0x1b8   :  { %3334 = vmatmul.msk.f32.gmra.mxu2 %vm44_vm0, %v4335_v57  ;;  %3350 = vmatmul.msk.f32.gmra.mxu3 %vm44_vm0, %v4335_v57  ;;  %v4468_v43 = vpop.f32.mrf.mxu0  ;;  %v4470_v47 = vpop.f32.mrf.mxu1 }
 0x1bb   :  { %3419 = vset.pattern.permute.xlu2 %v3442_v18 }
 0x1bc   :  { %2538 = vperm.xlu2 %3419, %v4187_v24  }
 0x1bd   :  { %3307 = vmatmul.msk.f32.gmra.mxu0 %vm44_vm0, %v1789_v4 }
 0x1bf   :  { %3319 = vmatmul.msk.f32.gmra.mxu1 %vm44_vm0, %v4357_v14  ;;  %v4478_v19 = vpop.f32.mrf.mxu2  ;;  %v4480_v1 = vpop.f32.mrf.mxu3 }
 0x1c0   :  { %3335 = vmatmul.msk.f32.gmra.mxu2 %vm44_vm0, %v4357_v14  ;;  %3351 = vmatmul.msk.f32.gmra.mxu3 %vm44_vm0, %v4357_v14  ;;  %v4486_v23 = vpop.f32.mrf.mxu0  ;;  %v4488_v21 = vpop.f32.mrf.mxu1  ;;  %v3441_v14 = vmov 9  }
 0x1c1   :  { %v4551_v2 = vpop.permute.xlu0 %2452  ;;  %3425 = vset.pattern.permute.xlu1 %v3441_v14 }
 0x1c2   :  { %2753 = vperm.xlu1 %3425, %v4187_v24  }
 0x1c5   :  { %3308 = vmatmul.msk.f32.gmra.mxu0 %vm44_vm0, %v1790_v30 }
 0x1c7   :  { %3320 = vmatmul.msk.f32.gmra.mxu1 %vm44_vm0, %v4387_v52  ;;  %v4496_v13 = vpop.f32.mrf.mxu2  ;;  %v4498_v31 = vpop.f32.mrf.mxu3 }
 0x1c8   :  { %3336 = vmatmul.msk.f32.gmra.mxu2 %vm44_vm0, %v4387_v52  ;;  %3352 = vmatmul.msk.f32.gmra.mxu3 %vm44_vm0, %v4387_v52  ;;  %v4504_v49 = vpop.f32.mrf.mxu0  ;;  %v4506_v55 = vpop.f32.mrf.mxu1  ;;  %v4570_v52 = vand.u32 127, %v2365_v58 }
 0x1ca   :  { %vm2454_vm4 = vcmp.eq.s32.totalorder %v4570_v52, %v4551_v2  ;;  %v3447_v2 = vmov 15  }
 0x1cb   :  { %3428 = vset.pattern.permute.xlu1 %v3447_v2 }
 0x1cc   :  { %3011 = vperm.xlu1 %3428, %v4187_v24  }
 0x1cd   :  { %3309 = vmatmul.msk.f32.gmra.mxu0 %vm44_vm0, %v1791_v56 }
 0x1cf   :  { %3321 = vmatmul.msk.f32.gmra.mxu1 %vm44_vm0, %v1787_v17  ;;  %v4513_v60 = vpop.f32.mrf.mxu2  ;;  %v4515_v63 = vpop.f32.mrf.mxu3 }
 0x1d0   :  { %3337 = vmatmul.msk.f32.gmra.mxu2 %vm44_vm0, %v1787_v17  ;;  %3353 = vmatmul.msk.f32.gmra.mxu3 %vm44_vm0, %v1787_v17  ;;  %v4519_v16 = vpop.f32.mrf.mxu0  ;;  %v4521_v0 = vpop.f32.mrf.mxu1 }
 0x1d1   :  { %v2391_v17 = vpop.permute.xlu0 %2390 }
 0x1d2   :  { %vm2392_vm1 = vcmp.eq.s32.totalorder %v4570_v52, %v2391_v17  ;;  %v3444_v17 = vmov 12  }
 0x1d3   :  { %3427 = vset.pattern.permute.xlu0 %v3444_v17 }
 0x1d4   :  { %2882 = vperm.xlu0 %3427, %v4187_v24  }
 0x1d5   :  { %3310 = vmatmul.msk.f32.gmra.mxu0 %vm44_vm0, %v4526_v8 }
 0x1d7   :  { %3322 = vmatmul.msk.f32.gmra.mxu1 %vm44_vm0, %v1788_v48  ;;  %v4531_v26 = vpop.f32.mrf.mxu2  ;;  %v4533_v27 = vpop.f32.mrf.mxu3 }
 0x1d8   :  { %3338 = vmatmul.msk.f32.gmra.mxu2 %vm44_vm0, %v1788_v48  ;;  %3354 = vmatmul.msk.f32.gmra.mxu3 %vm44_vm0, %v1788_v48  ;;  %v1317_v36 = vpop.f32.mrf.mxu0  ;;  %v4537_v39 = vpop.f32.mrf.mxu1 }
 0x1dc   :  { %3430 = vset.pattern.permute.xlu0 %v3447_v2 }
 0x1dd   :  { %3311 = vmatmul.msk.f32.gmra.mxu0 %vm44_vm0, %v4192_v25 }
 0x1df   :  { %3323 = vmatmul.msk.f32.gmra.mxu1 %vm44_vm0, %v1789_v4  ;;  %v4543_v44 = vpop.f32.mrf.mxu2  ;;  %v4545_v53 = vpop.f32.mrf.mxu3 }
 0x1e0   :  { %3339 = vmatmul.msk.f32.gmra.mxu2 %vm44_vm0, %v1789_v4  ;;  %3355 = vmatmul.msk.f32.gmra.mxu3 %vm44_vm0, %v1789_v4  ;;  %v1320_v57 = vpop.f32.mrf.mxu0  ;;  %v4549_v61 = vpop.f32.mrf.mxu1 }
 0x1e5   :  { %3312 = vmatmul.msk.f32.gmra.mxu0 %vm44_vm0, %v4212_v38 }
 0x1e7   :  { %3324 = vmatmul.msk.f32.gmra.mxu1 %vm44_vm0, %v1790_v30  ;;  %v4557_v9 = vpop.f32.mrf.mxu2  ;;  %v4559_v10 = vpop.f32.mrf.mxu3 }
 0x1e8   :  { %3340 = vmatmul.msk.f32.gmra.mxu2 %vm44_vm0, %v1790_v30  ;;  %3356 = vmatmul.msk.f32.gmra.mxu3 %vm44_vm0, %v1790_v30  ;;  %v1323_v62 = vpop.f32.mrf.mxu0  ;;  %v4564_v32 = vpop.f32.mrf.mxu1 }
 0x1ed   :  { %3313 = vmatmul.msk.f32.gmra.mxu0 %vm44_vm0, %v4232_v41 }
 0x1ef   :  { %3325 = vmatmul.msk.f32.gmra.mxu1 %vm44_vm0, %v1791_v56  ;;  %v4573_v48 = vpop.f32.mrf.mxu2  ;;  %v4575_v4 = vpop.f32.mrf.mxu3 }
 0x1f0   :  { %3341 = vmatmul.msk.f32.gmra.mxu2 %vm44_vm0, %v1791_v56  ;;  %3357 = vmatmul.msk.f32.gmra.mxu3 %vm44_vm0, %v1791_v56  ;;  %v4579_v30 = vpop.f32.mrf.mxu1  ;;  %v4581_v42 = vpop.f32.mrf.mxu0 }
 0x1f5   :  { %3364 = vmatmul.msk.f32.vlgmr.msra.gmra.mxu0 %vm2392_vm1, %v3443_v6 }
 0x1f6   :  { %2731 = vmatpush.msra.mxu0 %v1323_v62  ;;  %v3445_v62 = vmov 5  }
 0x1f7   :  { %3326 = vmatmul.msk.f32.gmra.mxu1 %vm44_vm0, %v4526_v8  ;;  %v4588_v50 = vpop.f32.mrf.mxu2  ;;  %v4590_v56 = vpop.f32.mrf.mxu3  ;;  %3421 = vset.pattern.permute.xlu2 %v3445_v62  ;;  %v4937_v62 = vld [vmem:[#allocation18_spill] sm:$0xff] }
 0x1f8   :  { %3342 = vmatmul.msk.f32.gmra.mxu2 %vm44_vm0, %v4526_v8  ;;  %3358 = vmatmul.msk.f32.gmra.mxu3 %vm44_vm0, %v4526_v8  ;;  %v4596_v58 = vpop.f32.mrf.mxu1  ;;  %v4598_v14 = vpop.f32.mrf.mxu0 }
 0x1f9   :  { %2732 = vmatpush.msra.mxu0 %v1320_v57  ;;  %2581 = vperm.xlu2 %3421, %v4187_v24  }
 0x1fb   :  { %2733 = vmatpush.msra.mxu0 %v1317_v36 }
 0x1fd   :  { %2734 = vmatpush.msra.mxu0 %v4519_v16  ;;  %v3446_v16 = vmov 11  }
 0x1ff   :  { %3327 = vmatmul.msk.f32.gmra.mxu1 %vm44_vm0, %v4192_v25  ;;  %2735 = vmatpush.msra.mxu0 %v4504_v49  ;;  %v1609_v8 = vpop.f32.mrf.mxu2  ;;  %v1755_v18 = vpop.f32.mrf.mxu3 }
 0x200   :  { %3343 = vmatmul.msk.f32.gmra.mxu2 %vm44_vm0, %v4192_v25  ;;  %3359 = vmatmul.msk.f32.gmra.mxu3 %vm44_vm0, %v4192_v25  ;;  %v1466_v36 = vpop.f32.mrf.mxu1  ;;  %v4610_v57 = vpop.f32.mrf.mxu0 }
 0x201   :  { %2736 = vmatpush.msra.mxu0 %v4486_v23  ;;  %3424 = vset.pattern.permute.xlu2 %v3446_v16  ;;  %v2496_v49 = vpop.permute.xlu1 %2495 }
 0x202   :  { %2839 = vperm.xlu2 %3424, %v4187_v24   ;;  %vm2497_vm3 = vcmp.eq.s32.totalorder %v4570_v52, %v2496_v49 }
 0x203   :  { %2737 = vmatpush.msra.mxu0 %v4468_v43 }
 0x205   :  { %2738 = vmatpush.msra.mxu0 %v4438_v51 }
 0x207   :  { %3328 = vmatmul.msk.f32.gmra.mxu1 %vm44_vm0, %v4212_v38  ;;  %2739 = vmatpush.msra.mxu0 %v4404_v12  ;;  %v1612_v25 = vpop.f32.mrf.mxu2  ;;  %v1758_v17 = vpop.f32.mrf.mxu3 }
 0x208   :  { %3344 = vmatmul.msk.f32.gmra.mxu2 %vm44_vm0, %v4212_v38  ;;  %3360 = vmatmul.msk.f32.gmra.mxu3 %vm44_vm0, %v4212_v38  ;;  %v1469_v43 = vpop.f32.mrf.mxu1  ;;  %v4623_v51 = vpop.f32.mrf.mxu0 }
 0x209   :  { %2740 = vmatpush.msra.mxu0 %v4375_v54 }
 0x20b   :  { %2741 = vmatpush.msra.mxu0 %v4346_v20  ;;  %v4936_v20 = vld [vmem:[#allocation12_spill] sm:$0xff] }
 0x20d   :  { %2742 = vmatpush.msra.mxu0 %v4319_v28  ;;  %v2369_v28 = vpop.permute.xlu1 %2368 }
 0x20e   :  { %vm2370_vm2 = vcmp.eq.s32.totalorder %v4570_v52, %v2369_v28 }
 0x20f   :  { %3329 = vmatmul.msk.f32.gmra.mxu1 %vm44_vm0, %v4232_v41  ;;  %2743 = vmatpush.msra.mxu0 %v4297_v34  ;;  %v1615_v12 = vpop.f32.mrf.mxu2  ;;  %v1761_v23 = vpop.f32.mrf.mxu3  ;;  %v4938_v34 = vld [vmem:[#allocation17_spill] sm:$0xff] }
 0x210   :  { %3345 = vmatmul.msk.f32.gmra.mxu2 %vm44_vm0, %v4232_v41  ;;  %3361 = vmatmul.msk.f32.gmra.mxu3 %vm44_vm0, %v4232_v41  ;;  %v4635_v38 = vpop.f32.mrf.mxu0  ;;  %v4637_v54 = vpop.f32.mrf.mxu1 }
 0x211   :  { %2744 = vmatpush.msra.mxu0 %v4936_v20 }
 0x213   :  { %2745 = vmatpush.msra.mxu0 %v4937_v62 }
 0x215   :  { %2746 = vmatpush.msra.mxu0 %v4938_v34 }
 0x217   :  { %3365 = vmatmul.msk.f32.vlgmr.msrb.gmra.mxu1 %vm2370_vm2, %v3443_v6  ;;  %v4647_v41 = vpop.f32.mrf.mxu2  ;;  %v4649_v16 = vpop.f32.mrf.mxu3 }
 0x218   :  { %3369 = vmatmul.msk.f32.vlgmr.msrb.gmra.mxu3 %vm2497_vm3, %v3443_v6  ;;  %2774 = vmatpush.msrb.mxu1 %v1469_v43  ;;  %v4652_v20 = vpop.f32.mrf.mxu0 }
 0x219   :  { %2860 = vmatpush.msrb.mxu3 %v1761_v23  ;;  %3367 = vmatmul.msk.f32.vlgmr.msrb.gmra.mxu2 %vm2454_vm4, %v3443_v6  ;;  %v4655_v49 = vpop.f32.mrf.mxu1 }
 0x21a   :  { %2817 = vmatpush.msrb.mxu2 %v1615_v12  ;;  %2775 = vmatpush.msrb.mxu1 %v1466_v36 }
 0x21b   :  { %2861 = vmatpush.msrb.mxu3 %v1758_v17 }
 0x21c   :  { %2818 = vmatpush.msrb.mxu2 %v1612_v25  ;;  %2776 = vmatpush.msrb.mxu1 %v4596_v58 }
 0x21d   :  { %2862 = vmatpush.msrb.mxu3 %v1755_v18 }
 0x21e   :  { %2819 = vmatpush.msrb.mxu2 %v1609_v8  ;;  %2777 = vmatpush.msrb.mxu1 %v4579_v30 }
 0x21f   :  { %2863 = vmatpush.msrb.mxu3 %v4590_v56 }
 0x220   :  { %2820 = vmatpush.msrb.mxu2 %v4588_v50  ;;  %2778 = vmatpush.msrb.mxu1 %v4564_v32  ;;  %v4663_v43 = vpop.f32.mrf.mxu2  ;;  %v4665_v36 = vpop.f32.mrf.mxu3  ;;  %v3448_v32 = vmov 14  }
 0x221   :  { %2864 = vmatpush.msrb.mxu3 %v4575_v4  ;;  %v4668_v58 = vpop.f32.mrf.mxu0  ;;  %3426 = vset.pattern.permute.xlu2 %v3448_v32  ;;  %v2797_v50 = vpop.permute.xlu0 %2796 }
 0x222   :  { %2821 = vmatpush.msrb.mxu2 %v4573_v48  ;;  %2779 = vmatpush.msrb.mxu1 %v4549_v61  ;;  %v4672_v30 = vpop.f32.mrf.mxu1  ;;  %vm2798_vm10 = vcmp.eq.s32.totalorder %v4570_v52, %v2797_v50 }
 0x223   :  { %2865 = vmatpush.msrb.mxu3 %v4559_v10  ;;  %2968 = vperm.xlu2 %3426, %v4187_v24  }
 0x224   :  { %2822 = vmatpush.msrb.mxu2 %v4557_v9  ;;  %2780 = vmatpush.msrb.mxu1 %v4537_v39 }
 0x225   :  { %2866 = vmatpush.msrb.mxu3 %v4545_v53 }
 0x226   :  { %2823 = vmatpush.msrb.mxu2 %v4543_v44  ;;  %2781 = vmatpush.msrb.mxu1 %v4521_v0 }
 0x227   :  { %2867 = vmatpush.msrb.mxu3 %v4533_v27 }
 0x228   :  { %2824 = vmatpush.msrb.mxu2 %v4531_v26  ;;  %2782 = vmatpush.msrb.mxu1 %v4506_v55  ;;  %v3449_v55 = vmov 13  }
 0x229   :  { %2868 = vmatpush.msrb.mxu3 %v4515_v63  ;;  %v4685_v61 = vpop.f32.mrf.mxu2  ;;  %v4687_v39 = vpop.f32.mrf.mxu3 }
 0x22a   :  { %2825 = vmatpush.msrb.mxu2 %v4513_v60  ;;  %2783 = vmatpush.msrb.mxu1 %v4488_v21  ;;  %v4691_v44 = vpop.f32.mrf.mxu0 }
 0x22b   :  { %2869 = vmatpush.msrb.mxu3 %v4498_v31  ;;  %v4694_v0 = vpop.f32.mrf.mxu1  ;;  %3429 = vset.pattern.permute.xlu2 %v3449_v55 }
 0x22c   :  { %2826 = vmatpush.msrb.mxu2 %v4496_v13  ;;  %2784 = vmatpush.msrb.mxu1 %v4470_v47  ;;  %v2668_v13 = vpop.permute.xlu1 %2667 }
 0x22d   :  { %2870 = vmatpush.msrb.mxu3 %v4480_v1  ;;  %2925 = vperm.xlu2 %3429, %v4187_v24   ;;  %v4939_v24 = vld [vmem:[#allocation15_spill] sm:$0xff]  ;;  %vm2669_vm7 = vcmp.eq.s32.totalorder %v4570_v52, %v2668_v13 }
 0x22e   :  { %2827 = vmatpush.msrb.mxu2 %v4478_v19  ;;  %2785 = vmatpush.msrb.mxu1 %v4442_v33 }
 0x22f   :  { %2871 = vmatpush.msrb.mxu3 %v4462_v11 }
 0x230   :  { %2828 = vmatpush.msrb.mxu2 %v4460_v29  ;;  %2786 = vmatpush.msrb.mxu1 %v4412_v7 }
 0x231   :  { %2872 = vmatpush.msrb.mxu3 %v4432_v15 }
 0x232   :  { %2829 = vmatpush.msrb.mxu2 %v4430_v59  ;;  %2787 = vmatpush.msrb.mxu1 %v4379_v45  ;;  %v4708_v47 = vpop.f32.mrf.mxu2  ;;  %v4710_v19 = vpop.f32.mrf.mxu3 }
 0x233   :  { %2873 = vmatpush.msrb.mxu3 %v4402_v3  ;;  %v4713_v33 = vpop.f32.mrf.mxu0 }
 0x234   :  { %2830 = vmatpush.msrb.mxu2 %v4397_v22  ;;  %2788 = vmatpush.msrb.mxu1 %v4352_v46  ;;  %v4717_v7 = vpop.f32.mrf.mxu1  ;;  %v2711_v53 = vpop.permute.xlu1 %2710 }
 0x235   :  { %2874 = vmatpush.msrb.mxu3 %v4366_v37  ;;  %vm2712_vm9 = vcmp.eq.s32.totalorder %v4570_v52, %v2711_v53 }
 0x236   :  { %2831 = vmatpush.msrb.mxu2 %v4362_v40  ;;  %2789 = vmatpush.msrb.mxu1 %v4939_v24  ;;  %v2625_v40 = vpop.permute.xlu2 %2624 }
 0x237   :  { %2875 = vmatpush.msrb.mxu3 %v4340_v35  ;;  %vm2626_vm5 = vcmp.eq.s32.totalorder %v4570_v52, %v2625_v40 }
 0x238   :  { %2832 = vmatpush.msrb.mxu2 %v4337_v5  ;;  %3377 = vmatmul.msk.f32.vlgmr.msra.gmra.mxu3 %vm2669_vm7, %v3443_v6 }
 0x239   :  { %3375 = vmatmul.msk.f32.vlgmr.msra.gmra.mxu2 %vm2626_vm5, %v3443_v6 }
 0x23b   :  { %v4724_v45 = vpop.f32.mrf.mxu2  ;;  %v4726_v3 = vpop.f32.mrf.mxu3 }
 0x23c   :  { %v1889_v59 = vpop.f32.mrf.mxu0  ;;  %v4728_v22 = vpop.f32.mrf.mxu1 }
 0x23d   :  { %v2754_v56 = vpop.permute.xlu1 %2753 }
 0x23e   :  { %v2539_v21 = vpop.permute.xlu2 %2538  ;;  %vm2755_vm11 = vcmp.eq.s32.totalorder %v4570_v52, %v2754_v56 }
 0x23f   :  { %vm2540_vm6 = vcmp.eq.s32.totalorder %v4570_v52, %v2539_v21 }
 0x240   :  { %3371 = vmatmul.msk.f32.vlgmr.msrb.gmra.mxu0 %vm2540_vm6, %v3443_v6 }
 0x241   :  { %3383 = vmatmul.msk.f32.vlgmr.msrb.gmra.mxu2 %vm2798_vm10, %v3443_v6 }
 0x243   :  { %v4730_v46 = vpop.f32.mrf.mxu2  ;;  %v4732_v15 = vpop.f32.mrf.mxu3 }
 0x244   :  { %v1892_v37 = vpop.f32.mrf.mxu0  ;;  %v4734_v29 = vpop.f32.mrf.mxu1 }
 0x248   :  { %3379 = vmatmul.msk.f32.vlgmr.msra.gmra.mxu0 %vm2712_vm9, %v3443_v6 }
 0x24b   :  { %v4738_v5 = vpop.f32.mrf.mxu2  ;;  %v4740_v35 = vpop.f32.mrf.mxu3 }
 0x24c   :  { %v1895_v11 = vpop.f32.mrf.mxu0  ;;  %v4742_v1 = vpop.f32.mrf.mxu1 }
 0x253   :  { %v4748_v31 = vpop.f32.mrf.mxu2  ;;  %v4750_v60 = vpop.f32.mrf.mxu3 }
 0x254   :  { %v1898_v63 = vpop.f32.mrf.mxu0  ;;  %v4752_v26 = vpop.f32.mrf.mxu1 }
 0x255   :  { %v2582_v27 = vpop.permute.xlu2 %2581 }
 0x256   :  { %vm2583_vm8 = vcmp.eq.s32.totalorder %v4570_v52, %v2582_v27 }
 0x257   :  { %3373 = vmatmul.msk.f32.vlgmr.msra.gmra.mxu1 %vm2583_vm8, %v3443_v6 }
 0x25b   :  { %v4758_v9 = vpop.f32.mrf.mxu2  ;;  %v4760_v10 = vpop.f32.mrf.mxu3 }
 0x25c   :  { %v1901_v48 = vpop.f32.mrf.mxu0  ;;  %v2035_v4 = vpop.f32.mrf.mxu1 }
 0x25d   :  { %v2840_v8 = vpop.permute.xlu2 %2839 }
 0x25e   :  { %vm2841_vm12 = vcmp.eq.s32.totalorder %v4570_v52, %v2840_v8 }
 0x25f   :  { %3381 = vmatmul.msk.f32.vlgmr.msrb.gmra.mxu1 %vm2755_vm11, %v3443_v6  ;;  %3385 = vmatmul.msk.f32.vlgmr.msrb.gmra.mxu3 %vm2841_vm12, %v3443_v6 }
 0x263   :  { %v4768_v18 = vpop.f32.mrf.mxu2  ;;  %v4770_v25 = vpop.f32.mrf.mxu3 }
 0x264   :  { %v1904_v17 = vpop.f32.mrf.mxu0  ;;  %v2038_v12 = vpop.f32.mrf.mxu1 }
 0x26b   :  { %v2184_v23 = vpop.f32.mrf.mxu2  ;;  %v2330_v28 = vpop.f32.mrf.mxu3 }
 0x26c   :  { %v1907_v62 = vpop.f32.mrf.mxu0  ;;  %v2041_v34 = vpop.f32.mrf.mxu1 }
 0x26d   :  { %2903 = vmatpush.msrb.mxu0 %v1907_v62 }
 0x26f   :  { %2904 = vmatpush.msrb.mxu0 %v1904_v17 }
 0x271   :  { %2905 = vmatpush.msrb.mxu0 %v1901_v48 }
 0x273   :  { %v2187_v2 = vpop.f32.mrf.mxu2  ;;  %v2333_v32 = vpop.f32.mrf.mxu3  ;;  %2906 = vmatpush.msrb.mxu0 %v1898_v63 }
 0x274   :  { %v2044_v55 = vpop.f32.mrf.mxu1 }
 0x275   :  { %2907 = vmatpush.msrb.mxu0 %v1895_v11 }
 0x277   :  { %2908 = vmatpush.msrb.mxu0 %v1892_v37  ;;  %v2883_v37 = vpop.permute.xlu0 %2882 }
 0x278   :  { %vm2884_vm13 = vcmp.eq.s32.totalorder %v4570_v52, %v2883_v37 }
 0x279   :  { %2909 = vmatpush.msrb.mxu0 %v1889_v59 }
 0x27b   :  { %v2190_v24 = vpop.f32.mrf.mxu2  ;;  %v2336_v40 = vpop.f32.mrf.mxu3  ;;  %2910 = vmatpush.msrb.mxu0 %v4713_v33 }
 0x27c   :  { %v2047_v21 = vpop.f32.mrf.mxu1 }
 0x27d   :  { %2911 = vmatpush.msrb.mxu0 %v4691_v44 }
 0x27f   :  { %2912 = vmatpush.msrb.mxu0 %v4668_v58 }
 0x281   :  { %2913 = vmatpush.msrb.mxu0 %v4652_v20 }
 0x283   :  { %v2193_v13 = vpop.f32.mrf.mxu2  ;;  %v2339_v27 = vpop.f32.mrf.mxu3  ;;  %2914 = vmatpush.msrb.mxu0 %v4635_v38 }
 0x284   :  { %v2050_v63 = vpop.f32.mrf.mxu1 }
 0x285   :  { %2915 = vmatpush.msrb.mxu0 %v4623_v51  ;;  %v3075_v51 = vld [vmem:[%s4880_s4 + $0x78] sm:$0xff] }
 0x287   :  { %2916 = vmatpush.msrb.mxu0 %v4610_v57  ;;  %v3012_v57 = vpop.permute.xlu1 %3011 }
 0x288   :  { %vm3013_vm15 = vcmp.eq.s32.totalorder %v4570_v52, %v3012_v57 }
 0x289   :  { %2917 = vmatpush.msrb.mxu0 %v4598_v14 }
 0x28b   :  { %v2196_v33 = vpop.f32.mrf.mxu2  ;;  %v2342_v44 = vpop.f32.mrf.mxu3  ;;  %2918 = vmatpush.msrb.mxu0 %v4581_v42 }
 0x28c   :  { %v2053_v58 = vpop.f32.mrf.mxu1  ;;  %3387 = vmatmul.msk.f32.vlgmr.msrb.gmra.mxu0 %vm2884_vm13, %v3443_v6  ;;  %v2969_v42 = vpop.permute.xlu2 %2968 }
 0x28d   :  { %2946 = vmatpush.msra.mxu1 %v2053_v58  ;;  %vm2970_vm0 = vcmp.eq.s32.totalorder %v4570_v52, %v2969_v42  ;;  %3080 = vmatpush.msra.mxu0 %v3075_v51 }
 0x28f   :  { %2947 = vmatpush.msra.mxu1 %v2050_v63 }
 0x291   :  { %2948 = vmatpush.msra.mxu1 %v2047_v21  ;;  %v3432_v21 = vld [vmem:[%s4879_s5] ss:$0 sm:$0xff] }
 0x293   :  { %v2199_v38 = vpop.f32.mrf.mxu2  ;;  %v2345_v20 = vpop.f32.mrf.mxu3  ;;  %2949 = vmatpush.msra.mxu1 %v2044_v55 }
 0x294   :  { %2989 = vmatpush.msra.mxu2 %v2199_v38  ;;  %3032 = vmatpush.msra.mxu3 %v2345_v20  ;;  %v2926_v14 = vpop.permute.xlu2 %2925 }
 0x295   :  { %2950 = vmatpush.msra.mxu1 %v2041_v34  ;;  %vm2927_vm14 = vcmp.eq.s32.totalorder %v4570_v52, %v2926_v14  ;;  %v3073_v52 = vld [vmem:[%s4880_s4 + $0x68] sm:$0xff] }
 0x296   :  { %2990 = vmatpush.msra.mxu2 %v2196_v33  ;;  %3033 = vmatpush.msra.mxu3 %v2342_v44 }
 0x297   :  { %2951 = vmatpush.msra.mxu1 %v2038_v12 }
 0x298   :  { %2991 = vmatpush.msra.mxu2 %v2193_v13  ;;  %3034 = vmatpush.msra.mxu3 %v2339_v27 }
 0x299   :  { %2952 = vmatpush.msra.mxu1 %v2035_v4 }
 0x29a   :  { %2992 = vmatpush.msra.mxu2 %v2190_v24  ;;  %3035 = vmatpush.msra.mxu3 %v2336_v40 }
 0x29b   :  { %2953 = vmatpush.msra.mxu1 %v4752_v26  ;;  %v3060_v26 = vld [vmem:[%s4880_s4] sm:$0xff] }
 0x29c   :  { %2993 = vmatpush.msra.mxu2 %v2187_v2  ;;  %3036 = vmatpush.msra.mxu3 %v2333_v32  ;;  %v3431_v2 = vld [vmem:[%s4878_s3] ss:$0 sm:$0xff] }
 0x29d   :  { %2954 = vmatpush.msra.mxu1 %v4742_v1  ;;  %v3062_v1 = vld [vmem:[%s4880_s4 + $0x10] sm:$0xff] }
 0x29e   :  { %2994 = vmatpush.msra.mxu2 %v2184_v23  ;;  %3037 = vmatpush.msra.mxu3 %v2330_v28 }
 0x29f   :  { %2955 = vmatpush.msra.mxu1 %v4734_v29  ;;  %v3064_v29 = vld [vmem:[%s4880_s4 + $0x20] sm:$0xff] }
 0x2a0   :  { %2995 = vmatpush.msra.mxu2 %v4768_v18  ;;  %3038 = vmatpush.msra.mxu3 %v4770_v25 }
 0x2a1   :  { %2956 = vmatpush.msra.mxu1 %v4728_v22 }
 0x2a2   :  { %2996 = vmatpush.msra.mxu2 %v4758_v9  ;;  %3039 = vmatpush.msra.mxu3 %v4760_v10 }
 0x2a3   :  { %2957 = vmatpush.msra.mxu1 %v4717_v7  ;;  %v3067_v7 = vld [vmem:[%s4880_s4 + $0x38] sm:$0xff] }
 0x2a4   :  { %2997 = vmatpush.msra.mxu2 %v4748_v31  ;;  %3040 = vmatpush.msra.mxu3 %v4750_v60  ;;  %v3061_v60 = vld [vmem:[%s4880_s4 + $0x8] sm:$0xff] }
 0x2a5   :  { %2958 = vmatpush.msra.mxu1 %v4694_v0  ;;  %v2533_v0 = vpop.f32.mrf.mxu3 }
 0x2a6   :  { %2998 = vmatpush.msra.mxu2 %v4738_v5  ;;  %3041 = vmatpush.msra.mxu3 %v4740_v35  ;;  %v3063_v35 = vld [vmem:[%s4880_s4 + $0x18] sm:$0xff] }
 0x2a7   :  { %2959 = vmatpush.msra.mxu1 %v4672_v30  ;;  %v3070_v30 = vld [vmem:[%s4880_s4 + $0x50] sm:$0xff] }
 0x2a8   :  { %2999 = vmatpush.msra.mxu2 %v4730_v46  ;;  %3042 = vmatpush.msra.mxu3 %v4732_v15  ;;  %v3065_v46 = vld [vmem:[%s4880_s4 + $0x28] sm:$0xff] }
 0x2a9   :  { %2960 = vmatpush.msra.mxu1 %v4655_v49 }
 0x2aa   :  { %3000 = vmatpush.msra.mxu2 %v4724_v45  ;;  %3043 = vmatpush.msra.mxu3 %v4726_v3  ;;  %v3066_v3 = vld [vmem:[%s4880_s4 + $0x30] sm:$0xff] }
 0x2ab   :  { %2961 = vmatpush.msra.mxu1 %v4637_v54  ;;  %v3074_v54 = vld [vmem:[%s4880_s4 + $0x70] sm:$0xff] }
 0x2ac   :  { %3001 = vmatpush.msra.mxu2 %v4708_v47  ;;  %3044 = vmatpush.msra.mxu3 %v4710_v19  ;;  %v3068_v47 = vld [vmem:[%s4880_s4 + $0x40] sm:$0xff] }
 0x2ad   :  { %3389 = vmatmul.msk.f32.vlgmr.msra.gmra.mxu1 %vm2927_vm14, %v3443_v6  ;;  %3081 = vmatpush.msra.mxu0 %v3074_v54 }
 0x2ae   :  { %3002 = vmatpush.msra.mxu2 %v4685_v61  ;;  %3045 = vmatpush.msra.mxu3 %v4687_v39  ;;  %v3069_v39 = vld [vmem:[%s4880_s4 + $0x48] sm:$0xff] }
 0x2af   :  { %3082 = vmatpush.msra.mxu0 %v3073_v52 }
 0x2b0   :  { %3003 = vmatpush.msra.mxu2 %v4663_v43  ;;  %3046 = vmatpush.msra.mxu3 %v4665_v36  ;;  %v2490_v43 = vpop.f32.mrf.mxu2  ;;  %v3071_v36 = vld [vmem:[%s4880_s4 + $0x58] sm:$0xff] }
 0x2b2   :  { %3004 = vmatpush.msra.mxu2 %v4647_v41  ;;  %3047 = vmatpush.msra.mxu3 %v4649_v16  ;;  %v3072_v41 = vld [vmem:[%s4880_s4 + $0x60] sm:$0xff]  ;;  %v2428_v16 = vpop.f32.mrf.mxu0 }
 0x2b3   :  { %3391 = vmatmul.msk.f32.vlgmr.msra.gmra.mxu2 %vm2970_vm0, %v3443_v6  ;;  %3393 = vmatmul.msk.f32.vlgmr.msra.gmra.mxu3 %vm3013_vm15, %v3443_v6  ;;  %v2448_v6 = vpop.f32.mrf.mxu1 }
 0x2b4   :  { %3083 = vmatpush.msra.mxu0 %v3072_v41  ;;  %v2449_v49 = vadd.f32 %v2448_v6, %v2428_v16 }
 0x2b6   :  { %3084 = vmatpush.msra.mxu0 %v3071_v36  ;;  %v2493_v61 = vadd.f32 %v2490_v43, %v2449_v49 }
 0x2b8   :  { %3085 = vmatpush.msra.mxu0 %v3070_v30  ;;  %v2536_v19 = vadd.f32 %v2533_v0, %v2493_v61 }
 0x2ba   :  { %3086 = vmatpush.msra.mxu0 %v3069_v39 }
 0x2bb   :  { %v2705_v31 = vpop.f32.mrf.mxu3 }
 0x2bc   :  { %3087 = vmatpush.msra.mxu0 %v3068_v47  ;;  %v2662_v5 = vpop.f32.mrf.mxu2 }
 0x2bd   :  { %v2576_v45 = vpop.f32.mrf.mxu0 }
 0x2be   :  { %3088 = vmatpush.msra.mxu0 %v3067_v7  ;;  %v2579_v59 = vadd.f32 %v2576_v45, %v2536_v19 }
 0x2c0   :  { %3089 = vmatpush.msra.mxu0 %v3066_v3 }
 0x2c2   :  { %3090 = vmatpush.msra.mxu0 %v3065_v46 }
 0x2c4   :  { %3091 = vmatpush.msra.mxu0 %v3064_v29  ;;  %v2834_v50 = vpop.f32.mrf.mxu2 }
 0x2c5   :  { %v2748_v9 = vpop.f32.mrf.mxu0 }
 0x2c6   :  { %3092 = vmatpush.msra.mxu0 %v3063_v35 }
 0x2c8   :  { %3093 = vmatpush.msra.mxu0 %v3062_v1 }
 0x2ca   :  { %3094 = vmatpush.msra.mxu0 %v3061_v60 }
 0x2cc   :  { %3095 = vmatpush.msra.mxu0 %v3060_v26 }
 0x2d4   :  { %v2619_v22 = vpop.f32.mrf.mxu1 }
 0x2d5   :  { %v2622_v15 = vadd.f32 %v2619_v22, %v2579_v59 }
 0x2d7   :  { %v2665_v11 = vadd.f32 %v2662_v5, %v2622_v15 }
 0x2d9   :  { %v2708_v53 = vadd.f32 %v2705_v31, %v2665_v11 }
 0x2db   :  { %v2751_v10 = vadd.f32 %v2748_v9, %v2708_v53 }
 0x2dc   :  { %v2791_v48 = vpop.f32.mrf.mxu1 }
 0x2dd   :  { %v2794_v4 = vadd.f32 %v2791_v48, %v2751_v10 }
 0x2df   :  { %v2837_v56 = vadd.f32 %v2834_v50, %v2794_v4 }
 0x2e2   :  { %v2877_v8 = vpop.f32.mrf.mxu3 }
 0x2e3   :  { %v2880_v25 = vadd.f32 %v2877_v8, %v2837_v56 }
 0x309   :  { %v2920_v18 = vpop.f32.mrf.mxu0 }
 0x30a   :  { %v2923_v12 = vadd.f32 %v2920_v18, %v2880_v25 }
 0x32a   :  { %v2963_v17 = vpop.f32.mrf.mxu1 }
 0x32b   :  { %v2966_v23 = vadd.f32 %v2963_v17, %v2923_v12 }
 0x336   :  { %v3006_v28 = vpop.f32.mrf.mxu2  ;;  %v3049_v62 = vpop.f32.mrf.mxu3 }
 0x337   :  { %v3009_v34 = vadd.f32 %v3006_v28, %v2966_v23 }
 0x339   :  { %v3052_v32 = vadd.f32 %v3049_v62, %v3009_v34 }
 0x33b   :  { %v3057_v55 = vadd.f32 %v3431_v2, %v3052_v32 }
 0x33d   :  { %v3058_v24 = vmul.f32 %v3057_v55, %v3057_v55 }
 0x33f   :  { %v3059_v40 = vmul.f32 %v3058_v24, %v3057_v55 }
 0x341   :  { %3096 = vmatmul.f32.vlgmr.msra.gmra.mxu0 %v3059_v40 }
 0x3be   :  { %v3097_v13 = vpop.f32.mrf.mxu0 }
 0x3bf   :  { %v3098_v27 = vadd.f32 %v3432_v21, %v3097_v13 }
 0x3c1   :  { %v3100_v63 = vmax.f32 %v3098_v27, 0.0 }
 0x3c3   :  { %3101 = vst [vmem:[%s4881_s6] sm:$0xff] %v3100_v63 }

</bundles_post_ra>
